<compile_context>
chip_gen: v7x
topology: tpu7x:2x2x1
jax: 0.10.0
libtpu: 0.0.40
codegen_flags: <defaults>
</compile_context>

<pallas_src>
import functools
import math

import jax
import jax.numpy as jnp
from jax.experimental import pallas as pl
from jax.experimental.pallas import tpu as pltpu

TAU = 2.0 * math.pi


def _round_up(x, m):
    return ((x + m - 1) // m) * m


# ---------------------------------------------------------------------------
# kernel
# ---------------------------------------------------------------------------
def shader_kernel(cam_ref, rd_ref, sn_ref, cmap_ref,
                  lam_ref, nrm_ref, tan_ref, spin_ref,
                  *, degree, chunk, n_cmap, factorized):
    """One grid step = (batch b, pixel tile j).

    cam_ref  : SMEM [B, 4]   camera-orientation conjugate quaternion (w,x,y,z)
    rd_ref   : VMEM [3, T]   ray directions (pixels on lanes)
    sn_ref   : VMEM [3, T]   surface normals
    cmap_ref : VMEM colour-map operand:
                 factorized : [3*N/16, 16]  (row c*N/16+hi, col lo)
                 flat       : [8, N]        (rows 3..7 zero)
    lam_ref  : VMEM [1, T];  nrm_ref / tan_ref / spin_ref : VMEM [3, T]
    """
    b = pl.program_id(0)
    cw = cam_ref[b, 0]
    cx = cam_ref[b, 1]
    cy = cam_ref[b, 2]
    cz = cam_ref[b, 3]
    # full (non-unit-safe) quaternion sandwich factor: q v q* with q=(cw,u)
    #   v' = (cw^2 - |u|^2) v + 2 (u.v) u + 2 cw (u x v)
    k_rot = cw * cw - (cx * cx + cy * cy + cz * cz)

    cmap_t = cmap_ref[...]                       # loop-invariant, loaded once
    tile = rd_ref.shape[1]
    num_chunks = tile // chunk
    two_chunk = 2 * chunk
    scale = float(degree * n_cmap)
    pow2 = (n_cmap & (n_cmap - 1)) == 0

    # hoisted loop-invariant iotas (JAX does not CSE broadcast_in_dim)
    if factorized:
        n_hi = n_cmap // 16
        iota_lo = jax.lax.broadcasted_iota(jnp.int32, (16, two_chunk), 0)
        iota_hi = iota_lo if n_hi == 16 else jax.lax.broadcasted_iota(
            jnp.int32, (n_hi, two_chunk), 0)
    else:
        iota_flat = jax.lax.broadcasted_iota(jnp.int32, (n_cmap, two_chunk), 0)

    @pl.loop(0, num_chunks)
    def _(c):
        start = pl.multiple_of(c * chunk, chunk)
        sl = pl.ds(start, chunk)

        rd = rd_ref[:, sl]                                 # [3, chunk]
        sn = sn_ref[:, sl]                                 # [3, chunk]

        # --- lambertian_shader: clamp(-(rd . sn), 0, 1) ---
        dot_rs = jnp.sum(rd * sn, axis=0, keepdims=True)   # [1, chunk]
        lam_ref[:, sl] = jnp.clip(-dot_rs, 0.0, 1.0)

        # --- normal_shader: |sn| ---
        nrm_ref[:, sl] = jnp.abs(sn)

        # --- tangent_shader: project_normals then rotate by cam conj ---
        proj = sn - dot_rs * rd                            # [3, chunk]
        px, py, pz = proj[0:1, :], proj[1:2, :], proj[2:3, :]
        udotp = cx * px + cy * py + cz * pz                # u . p
        tx_ = cy * pz - cz * py                            # (u x p).x
        ty_ = cz * px - cx * pz                            # (u x p).y
        rx = k_rot * px + 2.0 * (udotp * cx + cw * tx_)
        ry = k_rot * py + 2.0 * (udotp * cy + cw * ty_)
        # (rz unused: tangent colouring only needs components 0 and 1)

        # --- spin_shader: value = (0, sn) (x) cam_conj  (Hamilton product) ---
        snx, sny, snz = sn[0:1, :], sn[1:2, :], sn[2:3, :]
        a_ = -(snx * cx + sny * cy + snz * cz)
        qb = snx * cw + sny * cz - snz * cy
        qc = -snx * cz + sny * cw + snz * cx
        qd = snx * cy - sny * cx + snz * cw
        bcd_sq = qb * qb + qc * qc + qd * qd
        real_s = a_ * a_ - bcd_sq
        imag_s = 2.0 * a_ * jnp.sqrt(bcd_sq)

        # --- fused domain colouring (tangent ++ spin along the lane axis) ---
        real = jnp.concatenate([rx, real_s], axis=-1)      # [1, 2*chunk]
        imag = jnp.concatenate([ry, imag_s], axis=-1)      # [1, 2*chunk]
        angle = jnp.arctan2(imag, real)
        idx = jnp.floor((angle * (1.0 / TAU) + 0.5) * scale).astype(jnp.int32)
        if pow2:
            idx = jnp.bitwise_and(idx, n_cmap - 1)         # % N, power of two
        else:
            idx = idx % n_cmap
        mag = jnp.sqrt(real * real + imag * imag)          # [1, 2*chunk]

        if factorized:
            # two-level 16 x (N/16) one-hot gather
            idx_hi = jnp.right_shift(idx, 4)               # idx // 16
            idx_lo = jnp.bitwise_and(idx, 15)              # idx % 16
            oh_lo = (iota_lo == idx_lo).astype(jnp.float32)        # [16, 2c]
            oh_hi = (iota_hi == idx_hi).astype(jnp.float32) * mag  # [n_hi, 2c]
            # low-digit gather on the MXU: [3*n_hi,16] @ [16,2c] -> [3*n_hi,2c]
            partial = jnp.dot(cmap_t, oh_lo,
                              preferred_element_type=jnp.float32)
            rows = [
                jnp.sum(partial[ci * n_hi:(ci + 1) * n_hi, :] * oh_hi,
                        axis=0, keepdims=True)
                for ci in range(3)
            ]
            coloured = jnp.concatenate(rows, axis=0)       # [3, 2*chunk]
        else:
            # fallback: flat one-hot gather as a lane-dense MXU matmul
            onehot = (iota_flat == idx).astype(jnp.float32)
            colours = jnp.dot(cmap_t, onehot,
                              preferred_element_type=jnp.float32)
            coloured = colours[0:3, :] * mag               # [3, 2*chunk]

        tan_ref[:, sl] = coloured[:, :chunk]
        spin_ref[:, sl] = coloured[:, chunk:]


# ---------------------------------------------------------------------------
# wrapper (glue: roll cmap, conjugate camera quaternion, planar layout, pad)
# ---------------------------------------------------------------------------
def shader_forward(px_coords, camera_orientation, px_normals, ray_directions,
                   surface_coords, surface_normals, degree, cyclic_cmap):
    # px_coords / px_normals / surface_coords are unused by Shader.forward
    del px_coords, px_normals, surface_coords

    B, H, W, _ = surface_normals.shape
    HW = H * W
    N = cyclic_cmap.shape[0]

    # self.cyclic_cmap = self.cyclic_cmap.roll(65, -2)  (single forward pass)
    # TODO(synk): torch mutates the buffer in place, so repeated forwards keep
    # rolling; here the roll is applied once per call (first-call semantics).
    cmap = jnp.roll(cyclic_cmap.astype(jnp.float32), 65, axis=-2)      # [N, 3]

    factorized = (N % 128 == 0)
    if factorized:
        n_hi = N // 16
        # cmap_op[c*n_hi + hi, lo] = cmap[hi*16 + lo, c]
        cmap_op = jnp.transpose(cmap.reshape(n_hi, 16, 3),
                                (2, 0, 1)).reshape(3 * n_hi, 16)
    else:
        cmap_op = jnp.zeros((8, N), jnp.float32).at[0:3, :].set(cmap.T)

    # Q.conjugate(camera_orientation) -> small [B, 4] SMEM operand
    cam_conj = jnp.concatenate(
        [camera_orientation[..., 0:1], -camera_orientation[..., 1:4]],
        axis=-1).astype(jnp.float32)                                   # [B, 4]

    # planar [B, 3, HW] layout: pixels on the lane axis
    rd = jnp.transpose(ray_directions.astype(jnp.float32),
                       (0, 3, 1, 2)).reshape(B, 3, HW)
    sn = jnp.transpose(surface_normals.astype(jnp.float32),
                       (0, 3, 1, 2)).reshape(B, 3, HW)

    chunk = 512                                    # in-kernel lane slab
    HWc = _round_up(HW, chunk)
    tile = min(32768, HWc)                         # DMA pixel tile
    # megacore guard (v7x has 2 TCs): for B==1 force >=2 pixel tiles if possible
    if B == 1 and tile > chunk and (HWc + tile - 1) // tile < 2:
        tile = _round_up(HWc // 2, chunk)
    HWp = _round_up(HW, tile)
    n_tiles = HWp // tile
    if HWp != HW:
        pad = HWp - HW
        rd = jnp.pad(rd, ((0, 0), (0, 0), (0, pad)))
        sn = jnp.pad(sn, ((0, 0), (0, 0), (0, pad)))

    kernel = functools.partial(shader_kernel, degree=int(degree), chunk=chunk,
                               n_cmap=N, factorized=factorized)

    out_shapes = (
        jax.ShapeDtypeStruct((B, 1, HWp), jnp.float32),   # lambertian
        jax.ShapeDtypeStruct((B, 3, HWp), jnp.float32),   # normal
        jax.ShapeDtypeStruct((B, 3, HWp), jnp.float32),   # tangent
        jax.ShapeDtypeStruct((B, 3, HWp), jnp.float32),   # spin
    )
    in_specs = [
        pl.BlockSpec(memory_space=pltpu.MemorySpace.SMEM),          # cam_conj [B,4]
        pl.BlockSpec((None, 3, tile), lambda b, j: (b, 0, j)),      # ray directions
        pl.BlockSpec((None, 3, tile), lambda b, j: (b, 0, j)),      # surface normals
        pl.BlockSpec(cmap_op.shape, lambda b, j: (0, 0)),           # colourmap (whole)
    ]
    out_specs = (
        pl.BlockSpec((None, 1, tile), lambda b, j: (b, 0, j)),
        pl.BlockSpec((None, 3, tile), lambda b, j: (b, 0, j)),
        pl.BlockSpec((None, 3, tile), lambda b, j: (b, 0, j)),
        pl.BlockSpec((None, 3, tile), lambda b, j: (b, 0, j)),
    )

    lam, nrm, tan, spin = pl.pallas_call(
        kernel,
        out_shape=out_shapes,
        grid_spec=pltpu.PrefetchScalarGridSpec(
            num_scalar_prefetch=0,
            grid=(B, n_tiles),
            in_specs=in_specs,
            out_specs=out_specs,
        ),
        compiler_params=pltpu.CompilerParams(
            dimension_semantics=("parallel", "parallel")),
    )(cam_conj, rd, sn, cmap_op)

    def unflat(x):
        c = x.shape[1]
        return jnp.transpose(x[:, :, :HW].reshape(B, c, H, W), (0, 2, 3, 1))

    # base_layer = ones_like(normal_layer): produced lazily in the wrapper
    base = jnp.ones((B, H, W, 3), jnp.float32)
    # matches torch: (base_layer, (lambertian, normal, tangent, spin))
    return base, (unflat(lam), unflat(nrm), unflat(tan), unflat(spin))


# ---------------------------------------------------------------------------
# pure-JAX reference (mirrors the torch code) for correctness checking
# ---------------------------------------------------------------------------
def _reference(camera_orientation, ray_directions, surface_normals, degree, cyclic_cmap):
    cmap = jnp.roll(cyclic_cmap.astype(jnp.float32), 65, axis=-2)

    def hammul(p, q):
        p0, p1, p2, p3 = [p[..., i] for i in range(4)]
        q0, q1, q2, q3 = [q[..., i] for i in range(4)]
        return jnp.stack([
            p0 * q0 - p1 * q1 - p2 * q2 - p3 * q3,
            p0 * q1 + p1 * q0 + p2 * q3 - p3 * q2,
            p0 * q2 - p1 * q3 + p2 * q0 + p3 * q1,
            p0 * q3 + p1 * q2 - p2 * q1 + p3 * q0], axis=-1)

    def conj(q):
        return jnp.concatenate([q[..., 0:1], -q[..., 1:4]], axis=-1)

    cam = conj(camera_orientation)[:, None, None, :]                   # [B,1,1,4]
    dot = jnp.sum(ray_directions * surface_normals, -1, keepdims=True)
    lam = jnp.clip(-dot, 0.0, 1.0)
    nrm = jnp.abs(surface_normals)

    proj = surface_normals - dot * ray_directions
    camb = jnp.broadcast_to(cam, proj.shape[:-1] + (4,))
    vq = jnp.concatenate([jnp.zeros_like(proj[..., :1]), proj], -1)
    rot = hammul(hammul(camb, vq), conj(camb))[..., 1:4]

    def domain(re, im):
        n = cmap.shape[0]
        idx = jnp.floor((jnp.arctan2(im, re) / TAU + 0.5) * degree * n).astype(jnp.int32) % n
        return cmap[idx] * jnp.sqrt(re * re + im * im)[..., None]

    tan = domain(rot[..., 0], rot[..., 1])

    snq = jnp.concatenate([jnp.zeros_like(surface_normals[..., :1]), surface_normals], -1)
    val = hammul(snq, camb)
    a = val[..., 0]
    bcd = val[..., 1:4]
    bcd_sq = jnp.sum(bcd * bcd, -1)
    spin = domain(a * a - bcd_sq, 2.0 * a * jnp.sqrt(bcd_sq))
    return lam, nrm, tan, spin


# ---------------------------------------------------------------------------
if __name__ == "__main__":
    key = jax.random.PRNGKey(0)
    B, H, W = 2, 16, 16
    N_CMAP = 256
    ks = jax.random.split(key, 6)

    px_coords = jax.random.normal(ks[0], (B, H, W, 2), jnp.float32)
    camera_orientation = jax.random.normal(ks[1], (B, 4), jnp.float32)
    camera_orientation = camera_orientation / jnp.linalg.norm(
        camera_orientation, axis=-1, keepdims=True)
    px_normals = jax.random.normal(ks[2], (B, H, W, 3), jnp.float32)
    ray_directions = jax.random.normal(ks[3], (B, H, W, 3), jnp.float32)
    ray_directions = ray_directions / jnp.linalg.norm(
        ray_directions, axis=-1, keepdims=True)
    surface_coords = jax.random.normal(ks[4], (B, H, W, 3), jnp.float32)
    surface_normals = jax.random.normal(ks[5], (B, H, W, 3), jnp.float32)
    surface_normals = surface_normals / jnp.linalg.norm(
        surface_normals, axis=-1, keepdims=True)

    # Deterministic synthetic cyclic colourmap (stands in for data/cyclic_cmap.pt).
    i = jnp.arange(N_CMAP, dtype=jnp.float32)
    cyclic_cmap = jnp.stack(
        [0.5 + 0.5 * jnp.cos(TAU * i / N_CMAP + ph) for ph in (0.0, 2.0, 4.0)],
        axis=-1)  # [256, 3]

    degree = 2

    base, (lam, nrm, tan, spin) = shader_forward(
        px_coords, camera_orientation, px_normals, ray_directions,
        surface_coords, surface_normals, degree, cyclic_cmap)
    jax.block_until_ready((base, lam, nrm, tan, spin))

    # reference check
    lam_r, nrm_r, tan_r, spin_r = _reference(
        camera_orientation, ray_directions, surface_normals, degree, cyclic_cmap)

    def close_frac(a, b, atol=1e-4, rtol=1e-3):
        return float(jnp.mean((jnp.abs(a - b) <= atol + rtol * jnp.abs(b)).astype(jnp.float32)))

    assert base.shape == (B, H, W, 3) and lam.shape == (B, H, W, 1)
    assert nrm.shape == (B, H, W, 3) and tan.shape == (B, H, W, 3)
    assert spin.shape == (B, H, W, 3)
    assert jnp.allclose(base, jnp.ones((B, H, W, 3), jnp.float32))
    assert jnp.allclose(lam, lam_r, atol=1e-5)
    assert jnp.allclose(nrm, nrm_r, atol=1e-6)
    assert bool(jnp.all(jnp.isfinite(tan))) and bool(jnp.all(jnp.isfinite(spin)))
    # allow a tiny fraction of bin-boundary flips in the colour-map lookup
    assert close_frac(tan, tan_r) > 0.99, close_frac(tan, tan_r)
    assert close_frac(spin, spin_r) > 0.99, close_frac(spin, spin_r)

    print("KERNEL_OK")
</pallas_src>

<mosaic_0001>
module attributes {stable_mosaic.version = 11 : i64} {
  func.func @shader_kernel(%arg0: i32, %arg1: i32, %arg2: memref<2x4xf32, #tpu.memory_space<smem>>, %arg3: memref<1x3x512xf32, #tpu.memory_space<vmem>>, %arg4: memref<1x3x512xf32, #tpu.memory_space<vmem>>, %arg5: memref<48x16xf32, #tpu.memory_space<vmem>>, %arg6: memref<1x1x512xf32, #tpu.memory_space<vmem>>, %arg7: memref<1x3x512xf32, #tpu.memory_space<vmem>>, %arg8: memref<1x3x512xf32, #tpu.memory_space<vmem>>, %arg9: memref<1x3x512xf32, #tpu.memory_space<vmem>>) attributes {dimension_semantics = [#tpu.dimension_semantics<parallel>, #tpu.dimension_semantics<parallel>], iteration_bounds = array<i64: 2, 1>, scalar_prefetch = 0 : i64, scratch_operands = 0 : i64, tpu.core_type = #tpu.core_type<tc>, window_params = [{transform_indices = @transform_0, window_bounds = array<i64: 2, 4>}, {transform_indices = @transform_1, window_bounds = array<i64: 1, 3, 512>}, {transform_indices = @transform_2, window_bounds = array<i64: 1, 3, 512>}, {pipeline_mode = #tpu.pipeline_mode<synchronous>, transform_indices = @transform_3, window_bounds = array<i64: 48, 16>}, {transform_indices = @transform_4, window_bounds = array<i64: 1, 1, 512>}, {transform_indices = @transform_5, window_bounds = array<i64: 1, 3, 512>}, {transform_indices = @transform_6, window_bounds = array<i64: 1, 3, 512>}, {transform_indices = @transform_7, window_bounds = array<i64: 1, 3, 512>}]} {
    %0 = arith.index_cast %arg0 : i32 to index
    %c0 = arith.constant 0 : index
    %1 = memref.load %arg2[%0, %c0] : memref<2x4xf32, #tpu.memory_space<smem>>
    %2 = arith.index_cast %arg0 : i32 to index
    %c1 = arith.constant 1 : index
    %3 = memref.load %arg2[%2, %c1] : memref<2x4xf32, #tpu.memory_space<smem>>
    %4 = arith.index_cast %arg0 : i32 to index
    %c2 = arith.constant 2 : index
    %5 = memref.load %arg2[%4, %c2] : memref<2x4xf32, #tpu.memory_space<smem>>
    %6 = arith.index_cast %arg0 : i32 to index
    %c3 = arith.constant 3 : index
    %7 = memref.load %arg2[%6, %c3] : memref<2x4xf32, #tpu.memory_space<smem>>
    %8 = arith.mulf %1, %1 : f32
    %9 = arith.mulf %3, %3 : f32
    %10 = arith.mulf %5, %5 : f32
    %11 = arith.addf %9, %10 : f32
    %12 = arith.mulf %7, %7 : f32
    %13 = arith.addf %11, %12 : f32
    %14 = arith.subf %8, %13 : f32
    %c0_0 = arith.constant 0 : index
    %c0_1 = arith.constant 0 : index
    %15 = vector.load %arg5[%c0_0, %c0_1] : memref<48x16xf32, #tpu.memory_space<vmem>>, vector<48x16xf32>
    %16 = tpu.iota {dimensions = array<i32: 0>} : vector<16x1024xi32>
    %c0_i32 = arith.constant 0 : i32
    %c1_i32 = arith.constant 1 : i32
    %17 = arith.muli %c0_i32, %c1_i32 : i32
    %c0_i32_2 = arith.constant 0 : i32
    %18 = arith.addi %c0_i32_2, %17 : i32
    %c512_i32 = arith.constant 512 : i32
    %19 = arith.muli %18, %c512_i32 : i32
    %20 = tpu.assume_multiple %19, 512 : i32
    %c0_3 = arith.constant 0 : index
    %c0_4 = arith.constant 0 : index
    %21 = arith.index_cast %20 : i32 to index
    %22 = vector.load %arg3[%c0_3, %c0_4, %21] : memref<1x3x512xf32, #tpu.memory_space<vmem>>, vector<1x3x512xf32>
    %23 = vector.shape_cast %22 : vector<1x3x512xf32> to vector<3x512xf32>
    %c0_5 = arith.constant 0 : index
    %c0_6 = arith.constant 0 : index
    %24 = arith.index_cast %20 : i32 to index
    %25 = vector.load %arg4[%c0_5, %c0_6, %24] : memref<1x3x512xf32, #tpu.memory_space<vmem>>, vector<1x3x512xf32>
    %26 = vector.shape_cast %25 : vector<1x3x512xf32> to vector<3x512xf32>
    %27 = arith.mulf %23, %26 : vector<3x512xf32>
    %cst = arith.constant dense<0.000000e+00> : vector<512xf32>
    %28 = vector.multi_reduction <add>, %27, %cst [0] : vector<3x512xf32> to vector<512xf32>
    %29 = vector.shape_cast %28 : vector<512xf32> to vector<1x512xf32>
    %cst_7 = arith.constant 0.000000e+00 : f32
    %30 = vector.broadcast %cst_7 : f32 to vector<1x512xf32>
    %31 = arith.subf %30, %29 : vector<1x512xf32>
    %cst_8 = arith.constant 0.000000e+00 : f32
    %cst_9 = arith.constant 1.000000e+00 : f32
    %32 = vector.broadcast %cst_8 : f32 to vector<1x512xf32>
    %33 = arith.maximumf %32, %31 : vector<1x512xf32>
    %34 = vector.broadcast %cst_9 : f32 to vector<1x512xf32>
    %35 = arith.minimumf %34, %33 : vector<1x512xf32>
    %c0_10 = arith.constant 0 : index
    %c0_11 = arith.constant 0 : index
    %36 = arith.index_cast %20 : i32 to index
    %37 = vector.load %arg6[%c0_10, %c0_11, %36] : memref<1x1x512xf32, #tpu.memory_space<vmem>>, vector<1x1x512xf32>
    %38 = vector.shape_cast %37 : vector<1x1x512xf32> to vector<1x512xf32>
    %39 = vector.shape_cast %35 : vector<1x512xf32> to vector<1x1x512xf32>
    tpu.vector_store %arg6[%c0_10, %c0_11, %36], %39 {strides = array<i32>} : memref<1x1x512xf32, #tpu.memory_space<vmem>>, vector<1x1x512xf32>,
    %40 = math.absf %26 : vector<3x512xf32>
    %c0_12 = arith.constant 0 : index
    %c0_13 = arith.constant 0 : index
    %41 = arith.index_cast %20 : i32 to index
    %42 = vector.load %arg7[%c0_12, %c0_13, %41] : memref<1x3x512xf32, #tpu.memory_space<vmem>>, vector<1x3x512xf32>
    %43 = vector.shape_cast %42 : vector<1x3x512xf32> to vector<3x512xf32>
    %44 = vector.shape_cast %40 : vector<3x512xf32> to vector<1x3x512xf32>
    tpu.vector_store %arg7[%c0_12, %c0_13, %41], %44 {strides = array<i32>} : memref<1x3x512xf32, #tpu.memory_space<vmem>>, vector<1x3x512xf32>,
    %45 = vector.broadcast %29 : vector<1x512xf32> to vector<3x512xf32>
    %46 = arith.mulf %45, %23 : vector<3x512xf32>
    %47 = arith.subf %26, %46 : vector<3x512xf32>
    %48 = vector.extract_strided_slice %47 {offsets = [0, 0], sizes = [1, 512], strides = [1, 1]} : vector<3x512xf32> to vector<1x512xf32>
    %49 = vector.extract_strided_slice %47 {offsets = [1, 0], sizes = [1, 512], strides = [1, 1]} : vector<3x512xf32> to vector<1x512xf32>
    %50 = vector.extract_strided_slice %47 {offsets = [2, 0], sizes = [1, 512], strides = [1, 1]} : vector<3x512xf32> to vector<1x512xf32>
    %51 = vector.broadcast %3 : f32 to vector<1x512xf32>
    %52 = arith.mulf %51, %48 : vector<1x512xf32>
    %53 = vector.broadcast %5 : f32 to vector<1x512xf32>
    %54 = arith.mulf %53, %49 : vector<1x512xf32>
    %55 = arith.addf %52, %54 : vector<1x512xf32>
    %56 = vector.broadcast %7 : f32 to vector<1x512xf32>
    %57 = arith.mulf %56, %50 : vector<1x512xf32>
    %58 = arith.addf %55, %57 : vector<1x512xf32>
    %59 = vector.broadcast %5 : f32 to vector<1x512xf32>
    %60 = arith.mulf %59, %50 : vector<1x512xf32>
    %61 = vector.broadcast %7 : f32 to vector<1x512xf32>
    %62 = arith.mulf %61, %49 : vector<1x512xf32>
    %63 = arith.subf %60, %62 : vector<1x512xf32>
    %64 = vector.broadcast %7 : f32 to vector<1x512xf32>
    %65 = arith.mulf %64, %48 : vector<1x512xf32>
    %66 = vector.broadcast %3 : f32 to vector<1x512xf32>
    %67 = arith.mulf %66, %50 : vector<1x512xf32>
    %68 = arith.subf %65, %67 : vector<1x512xf32>
    %69 = vector.broadcast %14 : f32 to vector<1x512xf32>
    %70 = arith.mulf %69, %48 : vector<1x512xf32>
    %71 = vector.broadcast %3 : f32 to vector<1x512xf32>
    %72 = arith.mulf %58, %71 : vector<1x512xf32>
    %73 = vector.broadcast %1 : f32 to vector<1x512xf32>
    %74 = arith.mulf %73, %63 : vector<1x512xf32>
    %75 = arith.addf %72, %74 : vector<1x512xf32>
    %cst_14 = arith.constant 2.000000e+00 : f32
    %76 = vector.broadcast %cst_14 : f32 to vector<1x512xf32>
    %77 = arith.mulf %76, %75 : vector<1x512xf32>
    %78 = arith.addf %70, %77 : vector<1x512xf32>
    %79 = vector.broadcast %14 : f32 to vector<1x512xf32>
    %80 = arith.mulf %79, %49 : vector<1x512xf32>
    %81 = vector.broadcast %5 : f32 to vector<1x512xf32>
    %82 = arith.mulf %58, %81 : vector<1x512xf32>
    %83 = vector.broadcast %1 : f32 to vector<1x512xf32>
    %84 = arith.mulf %83, %68 : vector<1x512xf32>
    %85 = arith.addf %82, %84 : vector<1x512xf32>
    %cst_15 = arith.constant 2.000000e+00 : f32
    %86 = vector.broadcast %cst_15 : f32 to vector<1x512xf32>
    %87 = arith.mulf %86, %85 : vector<1x512xf32>
    %88 = arith.addf %80, %87 : vector<1x512xf32>
    %89 = vector.extract_strided_slice %26 {offsets = [0, 0], sizes = [1, 512], strides = [1, 1]} : vector<3x512xf32> to vector<1x512xf32>
    %90 = vector.extract_strided_slice %26 {offsets = [1, 0], sizes = [1, 512], strides = [1, 1]} : vector<3x512xf32> to vector<1x512xf32>
    %91 = vector.extract_strided_slice %26 {offsets = [2, 0], sizes = [1, 512], strides = [1, 1]} : vector<3x512xf32> to vector<1x512xf32>
    %92 = vector.broadcast %3 : f32 to vector<1x512xf32>
    %93 = arith.mulf %89, %92 : vector<1x512xf32>
    %94 = vector.broadcast %5 : f32 to vector<1x512xf32>
    %95 = arith.mulf %90, %94 : vector<1x512xf32>
    %96 = arith.addf %93, %95 : vector<1x512xf32>
    %97 = vector.broadcast %7 : f32 to vector<1x512xf32>
    %98 = arith.mulf %91, %97 : vector<1x512xf32>
    %99 = arith.addf %96, %98 : vector<1x512xf32>
    %cst_16 = arith.constant 0.000000e+00 : f32
    %100 = vector.broadcast %cst_16 : f32 to vector<1x512xf32>
    %101 = arith.subf %100, %99 : vector<1x512xf32>
    %102 = vector.broadcast %1 : f32 to vector<1x512xf32>
    %103 = arith.mulf %89, %102 : vector<1x512xf32>
    %104 = vector.broadcast %7 : f32 to vector<1x512xf32>
    %105 = arith.mulf %90, %104 : vector<1x512xf32>
    %106 = arith.addf %103, %105 : vector<1x512xf32>
    %107 = vector.broadcast %5 : f32 to vector<1x512xf32>
    %108 = arith.mulf %91, %107 : vector<1x512xf32>
    %109 = arith.subf %106, %108 : vector<1x512xf32>
    %cst_17 = arith.constant 0.000000e+00 : f32
    %110 = vector.broadcast %cst_17 : f32 to vector<1x512xf32>
    %111 = arith.subf %110, %89 : vector<1x512xf32>
    %112 = vector.broadcast %7 : f32 to vector<1x512xf32>
    %113 = arith.mulf %111, %112 : vector<1x512xf32>
    %114 = vector.broadcast %1 : f32 to vector<1x512xf32>
    %115 = arith.mulf %90, %114 : vector<1x512xf32>
    %116 = arith.addf %113, %115 : vector<1x512xf32>
    %117 = vector.broadcast %3 : f32 to vector<1x512xf32>
    %118 = arith.mulf %91, %117 : vector<1x512xf32>
    %119 = arith.addf %116, %118 : vector<1x512xf32>
    %120 = vector.broadcast %5 : f32 to vector<1x512xf32>
    %121 = arith.mulf %89, %120 : vector<1x512xf32>
    %122 = vector.broadcast %3 : f32 to vector<1x512xf32>
    %123 = arith.mulf %90, %122 : vector<1x512xf32>
    %124 = arith.subf %121, %123 : vector<1x512xf32>
    %125 = vector.broadcast %1 : f32 to vector<1x512xf32>
    %126 = arith.mulf %91, %125 : vector<1x512xf32>
    %127 = arith.addf %124, %126 : vector<1x512xf32>
    %128 = arith.mulf %109, %109 : vector<1x512xf32>
    %129 = arith.mulf %119, %119 : vector<1x512xf32>
    %130 = arith.addf %128, %129 : vector<1x512xf32>
    %131 = arith.mulf %127, %127 : vector<1x512xf32>
    %132 = arith.addf %130, %131 : vector<1x512xf32>
    %133 = arith.mulf %101, %101 : vector<1x512xf32>
    %134 = arith.subf %133, %132 : vector<1x512xf32>
    %cst_18 = arith.constant 2.000000e+00 : f32
    %135 = vector.broadcast %cst_18 : f32 to vector<1x512xf32>
    %136 = arith.mulf %135, %101 : vector<1x512xf32>
    %137 = math.sqrt %132 : vector<1x512xf32>
    %138 = arith.mulf %136, %137 : vector<1x512xf32>
    %139 = tpu.concatenate %78, %134 in 1 : vector<1x512xf32>, vector<1x512xf32> -> vector<1x1024xf32>
    %140 = tpu.concatenate %88, %138 in 1 : vector<1x512xf32>, vector<1x512xf32> -> vector<1x1024xf32>
    %141 = math.atan2 %140, %139 : vector<1x1024xf32>
    %cst_19 = arith.constant 0.159154937 : f32
    %142 = vector.broadcast %cst_19 : f32 to vector<1x1024xf32>
    %143 = arith.mulf %141, %142 : vector<1x1024xf32>
    %cst_20 = arith.constant 5.000000e-01 : f32
    %144 = vector.broadcast %cst_20 : f32 to vector<1x1024xf32>
    %145 = arith.addf %143, %144 : vector<1x1024xf32>
    %cst_21 = arith.constant 5.120000e+02 : f32
    %146 = vector.broadcast %cst_21 : f32 to vector<1x1024xf32>
    %147 = arith.mulf %145, %146 : vector<1x1024xf32>
    %148 = math.floor %147 : vector<1x1024xf32>
    %149 = arith.fptosi %148 : vector<1x1024xf32> to vector<1x1024xi32>
    %c255_i32 = arith.constant 255 : i32
    %150 = vector.broadcast %c255_i32 : i32 to vector<1x1024xi32>
    %151 = arith.andi %149, %150 : vector<1x1024xi32>
    %152 = arith.mulf %139, %139 : vector<1x1024xf32>
    %153 = arith.mulf %140, %140 : vector<1x1024xf32>
    %154 = arith.addf %152, %153 : vector<1x1024xf32>
    %155 = math.sqrt %154 : vector<1x1024xf32>
    %c4_i32 = arith.constant 4 : i32
    %156 = vector.broadcast %c4_i32 : i32 to vector<1x1024xi32>
    %157 = arith.shrsi %151, %156 : vector<1x1024xi32>
    %c15_i32 = arith.constant 15 : i32
    %158 = vector.broadcast %c15_i32 : i32 to vector<1x1024xi32>
    %159 = arith.andi %151, %158 : vector<1x1024xi32>
    %160 = vector.broadcast %159 : vector<1x1024xi32> to vector<16x1024xi32>
    %161 = arith.cmpi eq, %16, %160 : vector<16x1024xi32>
    %162 = arith.extui %161 : vector<16x1024xi1> to vector<16x1024xi32>
    %163 = arith.sitofp %162 : vector<16x1024xi32> to vector<16x1024xf32>
    %164 = vector.broadcast %157 : vector<1x1024xi32> to vector<16x1024xi32>
    %165 = arith.cmpi eq, %16, %164 : vector<16x1024xi32>
    %166 = arith.extui %165 : vector<16x1024xi1> to vector<16x1024xi32>
    %167 = arith.sitofp %166 : vector<16x1024xi32> to vector<16x1024xf32>
    %168 = vector.broadcast %155 : vector<1x1024xf32> to vector<16x1024xf32>
    %169 = arith.mulf %167, %168 : vector<16x1024xf32>
    %cst_22 = arith.constant dense<0.000000e+00> : vector<48x1024xf32>
    %170 = tpu.matmul %15, %163, %cst_22 {dimension_numbers = #tpu.dot_dimension_numbers<[1], [0], [0], [1], [0, 0, 1, 1], [], []>} : vector<48x16xf32>, vector<16x1024xf32>, vector<48x1024xf32> -> vector<48x1024xf32>
    %171 = vector.extract_strided_slice %170 {offsets = [0, 0], sizes = [16, 1024], strides = [1, 1]} : vector<48x1024xf32> to vector<16x1024xf32>
    %172 = arith.mulf %171, %169 : vector<16x1024xf32>
    %cst_23 = arith.constant dense<0.000000e+00> : vector<1024xf32>
    %173 = vector.multi_reduction <add>, %172, %cst_23 [0] : vector<16x1024xf32> to vector<1024xf32>
    %174 = vector.shape_cast %173 : vector<1024xf32> to vector<1x1024xf32>
    %175 = vector.extract_strided_slice %170 {offsets = [16, 0], sizes = [16, 1024], strides = [1, 1]} : vector<48x1024xf32> to vector<16x1024xf32>
    %176 = arith.mulf %175, %169 : vector<16x1024xf32>
    %cst_24 = arith.constant dense<0.000000e+00> : vector<1024xf32>
    %177 = vector.multi_reduction <add>, %176, %cst_24 [0] : vector<16x1024xf32> to vector<1024xf32>
    %178 = vector.shape_cast %177 : vector<1024xf32> to vector<1x1024xf32>
    %179 = vector.extract_strided_slice %170 {offsets = [32, 0], sizes = [16, 1024], strides = [1, 1]} : vector<48x1024xf32> to vector<16x1024xf32>
    %180 = arith.mulf %179, %169 : vector<16x1024xf32>
    %cst_25 = arith.constant dense<0.000000e+00> : vector<1024xf32>
    %181 = vector.multi_reduction <add>, %180, %cst_25 [0] : vector<16x1024xf32> to vector<1024xf32>
    %182 = vector.shape_cast %181 : vector<1024xf32> to vector<1x1024xf32>
    %183 = tpu.concatenate %174, %178, %182 in 0 : vector<1x1024xf32>, vector<1x1024xf32>, vector<1x1024xf32> -> vector<3x1024xf32>
    %184 = vector.extract_strided_slice %183 {offsets = [0, 0], sizes = [3, 512], strides = [1, 1]} : vector<3x1024xf32> to vector<3x512xf32>
    %c0_26 = arith.constant 0 : index
    %c0_27 = arith.constant 0 : index
    %185 = arith.index_cast %20 : i32 to index
    %186 = vector.load %arg8[%c0_26, %c0_27, %185] : memref<1x3x512xf32, #tpu.memory_space<vmem>>, vector<1x3x512xf32>
    %187 = vector.shape_cast %186 : vector<1x3x512xf32> to vector<3x512xf32>
    %188 = vector.shape_cast %184 : vector<3x512xf32> to vector<1x3x512xf32>
    tpu.vector_store %arg8[%c0_26, %c0_27, %185], %188 {strides = array<i32>} : memref<1x3x512xf32, #tpu.memory_space<vmem>>, vector<1x3x512xf32>,
    %189 = vector.extract_strided_slice %183 {offsets = [0, 512], sizes = [3, 512], strides = [1, 1]} : vector<3x1024xf32> to vector<3x512xf32>
    %c0_28 = arith.constant 0 : index
    %c0_29 = arith.constant 0 : index
    %190 = arith.index_cast %20 : i32 to index
    %191 = vector.load %arg9[%c0_28, %c0_29, %190] : memref<1x3x512xf32, #tpu.memory_space<vmem>>, vector<1x3x512xf32>
    %192 = vector.shape_cast %191 : vector<1x3x512xf32> to vector<3x512xf32>
    %193 = vector.shape_cast %189 : vector<3x512xf32> to vector<1x3x512xf32>
    tpu.vector_store %arg9[%c0_28, %c0_29, %190], %193 {strides = array<i32>} : memref<1x3x512xf32, #tpu.memory_space<vmem>>, vector<1x3x512xf32>,
    %c1_i32_30 = arith.constant 1 : i32
    return
  }
  func.func @transform_0(%arg0: i32, %arg1: i32) -> (i32, i32) {
    %c0_i32 = arith.constant 0 : i32
    %c0_i32_0 = arith.constant 0 : i32
    %c0_i32_1 = arith.constant 0 : i32
    return %c0_i32, %c0_i32_0 : i32, i32
  }
  func.func @transform_1(%arg0: i32, %arg1: i32) -> (i32, i32, i32) {
    %c0_i32 = arith.constant 0 : i32
    %c0_i32_0 = arith.constant 0 : i32
    return %arg0, %c0_i32, %arg1 : i32, i32, i32
  }
  func.func @transform_2(%arg0: i32, %arg1: i32) -> (i32, i32, i32) {
    %c0_i32 = arith.constant 0 : i32
    %c0_i32_0 = arith.constant 0 : i32
    return %arg0, %c0_i32, %arg1 : i32, i32, i32
  }
  func.func @transform_3(%arg0: i32, %arg1: i32) -> (i32, i32) {
    %c0_i32 = arith.constant 0 : i32
    %c0_i32_0 = arith.constant 0 : i32
    %c0_i32_1 = arith.constant 0 : i32
    return %c0_i32, %c0_i32_0 : i32, i32
  }
  func.func @transform_4(%arg0: i32, %arg1: i32) -> (i32, i32, i32) {
    %c0_i32 = arith.constant 0 : i32
    %c0_i32_0 = arith.constant 0 : i32
    return %arg0, %c0_i32, %arg1 : i32, i32, i32
  }
  func.func @transform_5(%arg0: i32, %arg1: i32) -> (i32, i32, i32) {
    %c0_i32 = arith.constant 0 : i32
    %c0_i32_0 = arith.constant 0 : i32
    return %arg0, %c0_i32, %arg1 : i32, i32, i32
  }
  func.func @transform_6(%arg0: i32, %arg1: i32) -> (i32, i32, i32) {
    %c0_i32 = arith.constant 0 : i32
    %c0_i32_0 = arith.constant 0 : i32
    return %arg0, %c0_i32, %arg1 : i32, i32, i32
  }
  func.func @transform_7(%arg0: i32, %arg1: i32) -> (i32, i32, i32) {
    %c0_i32 = arith.constant 0 : i32
    %c0_i32_0 = arith.constant 0 : i32
    return %arg0, %c0_i32, %arg1 : i32, i32, i32
  }
}

</mosaic_0001>

<bundles_post_ra>
// kernel: tpu_custom_call.1
= control target key start
LH: loop header
LB: loop body
LE: loop exit
PB: predicated region body
PF: predicated region fallthrough
CT: control target
= control target key end

     0   :  { %s4338_s0 = inlined_call_operand.vmem [shape: f32[2,4], index: 0, kind: input, shape index: {}]   ;;  %s4339_s1 = inlined_call_operand.vmem [shape: f32[2,3,512], index: 1, kind: input, shape index: {}]   ;;  %s4340_s2 = inlined_call_operand.vmem [shape: f32[2,3,512], index: 2, kind: input, shape index: {}]   ;;  %s4341_s3 = inlined_call_operand.vmem [shape: f32[48,16], index: 3, kind: input, shape index: {}]   ;;  %s4342_s4 = inlined_call_operand.hbm [shape: f32[2,1,512], index: 4, kind: output, shape index: {0}]   ;;  %s4343_s5 = inlined_call_operand.vmem [shape: f32[2,3,512], index: 5, kind: output, shape index: {1}]   ;;  %s4344_s6 = inlined_call_operand.vmem [shape: f32[2,3,512], index: 6, kind: output, shape index: {2}]   ;;  %s4345_s7 = inlined_call_operand.vmem [shape: f32[2,3,512], index: 7, kind: output, shape index: {3}]  }
   0x1   :  { %4377 = sst [smem:[#allocation27_spill]] %s4338_s0 }
   0x2   :  { %13 = vsyncpa [#allocation4], 0 }
   0x3   :  { %14 = vsyncpa [#allocation3], 0 }
   0x4   :  { %16 = vsyncpa [#allocation3 + $0x1], 0  ;;  %s2981_s24 = smov 0   ;;  %s2983_s25 = smov 0  }
   0x5   :  { %s2985_s26 = smov 0   ;;  %s2987_s27 = smov 0  }
   0x6   :  { %s2989_s28 = smov 0   ;;  %s2991_s29 = smov 0  }
   0x7 LB: > { %4378 = sst [smem:[#allocation8_spill]] %s2929_s28  ;;  %s2570_s30 = sadd.s32 4294967295, %s2933_s29   ;;  %s2933_s29 = sphi %s2991_s29, %s22_s29   ;;  %s2929_s28 = sphi %s2989_s28, %s4457_s28   ;;  %s2925_s27 = sphi %s2987_s27, %s4456_s27   ;;  %s2921_s26 = sphi %s2985_s26, %s4460_s26   ;;  %s2917_s25 = sphi %s2983_s25, %s4459_s25   ;;  %s2913_s24 = sphi %s2981_s24, %s4458_s24  }
   0x8   : > { %s2571_s8 = sadd.s32 4294967294, %s2933_s29   ;;  %s34_s9 = sadd.s32 1, %s2929_s28 }
   0x9   : > { %s141_s10 = sadd.s32 1, %s2921_s26  ;;  %p36_p0 = scmp.ge.s32.totalorder %s34_s9, 2 }
   0xa   : > { %p151_p1 = scmp.ne.s32.totalorder %s2921_s26, %s2917_s25  ;;  %p152_p2 = scmp.eq.s32.totalorder %s2570_s30, 1 }
   0xb   : > { %p157_p3 = scmp.ne.s32.totalorder %s2917_s25, %s2913_s24  ;;  %s4462_s9 = smov (%p36_p0, %s34_s9), 0 }
   0xc   : > { %4379 = sst [smem:[#allocation9_spill]] %s4462_s9  ;;  %p3021_p4 = por %p152_p2, %p151_p1 }
   0xd   : > { %p158_p5 = scmp.eq.s32.totalorder %s2571_s8, 1  ;;  %s136_s12 = ssub.s32 %s2929_s28, %s4462_s9 }
   0xe   : > { %p2572_p6 = scmp.ge.s32.totalorder %s2933_s29, 1  ;;  %p139_p7 = scmp.eq.s32.totalorder %s136_s12, 0 }
   0xf   : > { %p3028_p8 = por %p158_p5, %p157_p3  ;;  %p249_p9 = scmp.lt.s32.totalorder %s2933_s29, 3 }
  0x10   : > { %s3034_s14 = scalar_select %p139_p7, %s2921_s26, %s141_s10  }
  0x11   : > { %p3036_p10 = pnand %p2572_p6, %p249_p9  ;;  %p3040_p11 = scmp.eq.s32.totalorder %s2570_s30, 0 }
  0x12   : > { %4382 = sst [smem:[#allocation10_spill]] %s3034_s14  ;;  %s4385_s0 = sld [smem:[#allocation27_spill]] }
  0x13   : > { %p2734_p12 = pneg %p3036_p10 }
  0x15   : > { %p2735_p13 = pnand %p3040_p11, %p2734_p12 }
  0x17   : > { %p2838_p1 = pneg %p2735_p13 }
  0x18   : > { %s262_s19 = sshll.u32 %s4385_s0, 4  ;;  %s263_s19 = int_to_ptr.vmem [resolvable:$true] %s262_s19 }
  0x19   : > { %s2836_s20 = scalar_lea.vmem %s263_s19, 32  ;;  %p2844_p5 = scmp.lt.s32.totalorder %s263_s19, %s263_s19 }
  0x1a   : > { %p2837_p0 = scmp.ne.s32.totalorder %s263_s19, %s2836_s20  ;;  %p2845_p6 = scmp.lt.s32.totalorder %s2836_s20, %s2836_s20 }
  0x1c   : > { %p2839_p2 = pnand %p2838_p1, %p2837_p0  ;;  %p2846_p7 = por %p2845_p6, %p2844_p5 }
  0x1e   : > { %p2840_p3 = pneg %p2839_p2 }
  0x20   : > { %p2847_p9 = pnand %p2846_p7, %p2840_p3 }
  0x22   : > { %2850 = shalt.err (!%p2847_p9)
}
  0x23   : > { %s2935_s21 = smov [#allocation2]   ;;  %304 = sbr.rel (%p3036_p10) target bundleno = 520 (0x208), region = 36 }
  0x24   : > { %2737 = dma.vmem_to_smem (!%p2735_p13), %s263_s19, 32, %s2935_s21, [#allocation4]  }
  0x2a   : > { %2904 = dma.done.wait (%p3040_p11), [#allocation4], 32  }
  0x2b   : > { %2906 = vsyncadd (%p3040_p11), [#allocation4], 4294967264 }
  0x2c   : > { %310 = sfence }
  0x2d   : > { %p378_p12 = scmp.lt.s32.totalorder %s2925_s27, 1  ;;  %s2588_s22 = sshll.u32 %s2925_s27, 7  ;;  %v4351_v0 = vmov 0.0   ;;  %vm464_vm0 = vcmask 1042432  }
  0x2e   : > { %s3059_s23 = sld [smem:[#allocation2 + %s2588_s22]]  ;;  %s430_s30 = sadd.s32 1, %s2588_s22  ;;  %1703 = vmatprep.mubr.f32.mxu0 %v4351_v0  ;;  %1804 = vmatprep.mubr.f32.mxu1 %v4351_v0 }
  0x2f   : > { %s379_s8 = scalar_select %p378_p12, %s2925_s27, 1 }
  0x30   : > { %s3064_s10 = sld [smem:[#allocation2 + %s430_s30]]  ;;  %s432_s12 = sadd.s32 2, %s2588_s22 }
  0x31   : > { %s3066_s15 = sshll.u32 %s379_s8, 4  ;;  %s3068_s16 = sld [smem:[#allocation2 + %s432_s12]] }
  0x32   : > { %s385_s19 = scalar_lea.vmem %s4339_s1, %s3066_s15  ;;  %s395_s0 = scalar_lea.vmem %s4340_s2, %s3066_s15 }
  0x33   : > { %s406_s30 = scalar_lea.vmem %s4343_s5, %s3066_s15  ;;  %s434_s14 = sadd.s32 3, %s2588_s22  ;;  %v3082_v1 = vld [vmem:[%s385_s19] sm:$0x77]  ;;  %v3091_v5 = vld [vmem:[%s385_s19 + $0x8] sm:$0x77] }
  0x34   : > { %v3084_v2 = vld [vmem:[%s395_s0] sm:$0x77]  ;;  %s3086_s8 = sld [smem:[#allocation2 + %s434_s14]]  ;;  %v3094_v6 = vstv %s3059_s23  ;;  %v3096_v7 = vld [vmem:[%s395_s0 + $0x8] sm:$0x77]  ;;  %v545_v47 = vcombine.high %v3082_v1, %v3082_v1  ;;  %v546_v54 = vcombine.high %v3091_v5, %v3091_v5  ;;  %s436_s22 = smul.f32 %s3059_s23, %s3059_s23 }
  0x35   : > { %v456_v3 = vmul.f32 %v3084_v2, %v3082_v1  ;;  %v539_v4 = vand.u32 2147483647, %v3084_v2  ;;  %v457_v10 = vmul.f32 %v3096_v7, %v3091_v5  ;;  %v674_v11 = vmul.f32 %v3094_v6, %v3084_v2 }
  0x36   : > { %v3104_v13 = vstv %s3064_s10  ;;  %v540_v14 = vand.u32 2147483647, %v3096_v7  ;;  %v692_v15 = vsub.f32 0.0, %v3084_v2  ;;  %s437_s0 = smul.f32 %s3064_s10, %s3064_s10 }
  0x37   : > { %v460_v8 = vcombine.high %v456_v3, %v456_v3  ;;  %v465_v9 = vsel %vm464_vm0, %v456_v3, 0.0  ;;  %541 = vst [vmem:[%s406_s30] sm:$0x77] %v539_v4  ;;  %v461_v17 = vcombine.high %v457_v10, %v457_v10  ;;  %v479_v18 = vsel %vm464_vm0, %v457_v10, 0.0  ;;  %s438_s28 = smul.f32 %s3068_s16, %s3068_s16 }
  0x38   : > { %v466_v12 = vrot.slane %v465_v9, 4  ;;  %v3112_v19 = vmul.f32 %v3104_v13, %v3084_v2  ;;  %v3115_v22 = vstv %s3068_s16  ;;  %v480_v23 = vrot.slane %v479_v18, 4  ;;  %542 = vst [vmem:[%s406_s30 + $0x8] sm:$0x77] %v540_v14 }
  0x39   : > { %v472_v16 = vsel %vm464_vm0, %v460_v8, 0.0  ;;  %v486_v25 = vsel %vm464_vm0, %v461_v17, 0.0  ;;  %v3123_v26 = vmul.f32 %v3115_v22, %v3084_v2  ;;  %v2605_v27 = vrot.slane %v674_v11, 9  ;;  %s439_s9 = sadd.f32 %s438_s28, %s437_s0 }
  0x3a   : > { %v467_v20 = vadd.f32 %v466_v12, %v465_v9  ;;  %v473_v21 = vrot.slane %v472_v16, 4  ;;  %v3118_v24 = vstv %s3086_s8  ;;  %v481_v30 = vadd.f32 %v480_v23, %v479_v18  ;;  %s440_s14 = smul.f32 %s3086_s8, %s3086_s8 }
  0x3b   : > { %v487_v31 = vrot.slane %v486_v25, 4  ;;  %v3127_v32 = vmul.f32 %v3118_v24, %v3084_v2  ;;  %v694_v33 = vmul.f32 %v692_v15, %v3118_v24  ;;  %v2607_v34 = vrot.slane %v3112_v19, 10 }
  0x3c   : > { %v468_v28 = vrot.slane %v467_v20, 2  ;;  %v474_v29 = vadd.f32 %v473_v21, %v472_v16  ;;  %v482_v37 = vrot.slane %v481_v30, 2  ;;  %v2603_v40 = vrot.slane %v3123_v26, 10  ;;  %s441_s10 = sadd.f32 %s440_s14, %s439_s9  ;;  %s341_s14 = sand.u32 1, %s2917_s25  }
  0x3d   : > { %v488_v38 = vadd.f32 %v487_v31, %v486_v25  ;;  %v2601_v39 = vrot.slane %v3127_v32, 9  ;;  %v704_v41 = vadd.f32 %v2605_v27, %v694_v33  ;;  %v2609_v42 = vrot.slane %v3112_v19, 9  ;;  %s2298_s19 = scalar_lea.sflag [#allocation3], %s341_s14 }
  0x3e   : > { %v469_v35 = vadd.f32 %v468_v28, %v467_v20  ;;  %v475_v36 = vrot.slane %v474_v29, 2  ;;  %v483_v45 = vadd.f32 %v482_v37, %v481_v30  ;;  %v2611_v57 = vrot.slane %v674_v11, 10  ;;  %s3169_s12 = ssub.f32 %s436_s22, %s441_s10  ;;  %s2577_s22 = sshll.u32 %s341_s14, 2 }
  0x3f   : > { %v489_v46 = vrot.slane %v488_v38, 2  ;;  %v682_v48 = vadd.f32 %v2601_v39, %v674_v11  ;;  %v714_v49 = vadd.f32 %v2607_v34, %v704_v41  ;;  %v722_v56 = vsub.f32 %v3123_v26, %v2609_v42  ;;  %s2695_s10 = sshll.u32 %s2925_s27, 6  ;;  %s2940_s27 = smov [#allocation5]  }
  0x40   : > { %v470_v43 = vrot.slane %v469_v35, 1  ;;  %v476_v44 = vadd.f32 %v475_v36, %v474_v29  ;;  %v484_v52 = vrot.slane %v483_v45, 1  ;;  %v2597_v16 = vrot.slane %v3123_v26, 9  ;;  %s4123_s18 = scalar_lea.hbm %s4342_s4, %s2695_s10  ;;  %s2855_s21 = sshll.u32 %s2940_s27, 4  ;;  %s2856_s21 = int_to_ptr.vmem [resolvable:$false] %s2855_s21 }
  0x41   : > { %v490_v53 = vadd.f32 %v489_v46, %v488_v38  ;;  %v690_v55 = vsub.f32 %v682_v48, %v2603_v40  ;;  %v730_v62 = vadd.f32 %v2611_v57, %v722_v56  ;;  %v734_v3 = vmul.f32 %v714_v49, %v714_v49  ;;  %s2857_s30 = scalar_lea.vmem %s2856_s21, 128 }
  0x42   : > { %v3138_v50 = vadd.f32 %v470_v43, %v469_v35  ;;  %v477_v51 = vrot.slane %v476_v44, 1  ;;  %v3149_v60 = vadd.f32 %v484_v52, %v483_v45  ;;  %v4348_v21 = vlaneseq }
  0x43   : > { %v491_v61 = vrot.slane %v490_v53, 1  ;;  %v732_v63 = vmul.f32 %v690_v55, %v690_v55  ;;  %v738_v12 = vmul.f32 %v730_v62, %v730_v62  ;;  %v658_v31 = vadd.f32 %v2597_v16, %v3112_v19 }
  0x44   : > { %4386 = vst [vmem:[#allocation11_spill] sm:$0xff] %v3138_v50  ;;  %v3145_v58 = vadd.f32 %v477_v51, %v476_v44  ;;  %v549_v59 = vmul.f32 %v3138_v50, %v3082_v1  ;;  %4388 = vst [vmem:[#allocation13_spill] sm:$0xff] %v3149_v60  ;;  %v551_v9 = vmul.f32 %v3149_v60, %v3091_v5  ;;  %v2599_v43 = vrot.slane %v3127_v32, 10 }
  0x45   : > { %v3152_v8 = vadd.f32 %v491_v61, %v490_v53  ;;  %v736_v11 = vadd.f32 %v734_v3, %v732_v63  ;;  %v608_v44 = vstv %s3169_s12  ;;  %s343_s12 = scalar_lea.vmem [#allocation5], %s2577_s22 }
  0x46   : > { %4387 = vst [vmem:[#allocation12_spill] sm:$0xff] %v3145_v58  ;;  %v550_v4 = vmul.f32 %v545_v47, %v3145_v58  ;;  %v3181_v47 = vshrl.u32 %v4348_v21, 7  ;;  %v670_v62 = vadd.f32 %v2599_v43, %v658_v31  ;;  %s2341_s23 = sshll.u32 %s343_s12, 4  ;;  %s2342_s23 = int_to_ptr.vmem [resolvable:$true] %s2341_s23 }
  0x47   : > { %4389 = vst [vmem:[#allocation14_spill] sm:$0xff] %v3152_v8  ;;  %v552_v1 = vmul.f32 %v546_v54, %v3152_v8  ;;  %v3166_v20 = vadd.f32 %v738_v12, %v736_v11  ;;  %s2851_s20 = scalar_lea.vmem %s2342_s23, 64  ;;  %p2858_p0 = scmp.lt.s32.totalorder %s2342_s23, %s2856_s21 }
  0x48   : > { %v557_v10 = vcombine.low %v549_v59, %v550_v4  ;;  %4390 = vst [vmem:[#allocation15_spill] sm:$0xff] %v3181_v47  ;;  %v3190_v4 = vsub.s32 4, %v3181_v47  ;;  %p2852_p10 = scmp.ne.s32.totalorder %s2342_s23, %s2851_s20  ;;  %p2859_p1 = scmp.lt.s32.totalorder %s2857_s30, %s2851_s20 }
  0x49   : > { %v558_v15 = vcombine.low %v551_v9, %v552_v1  ;;  %2800 = vrsqrt.f32 %v3166_v20  ;;  %vm750_vm1 = vcmp.eq.f32.partialorder %v3166_v20, inf  ;;  %vm752_vm2 = vcmp.eq.f32.partialorder %v3166_v20, 0.0 }
  0x4a   : > { %v561_v14 = vsub.f32 %v3084_v2, %v557_v10  ;;  %p2853_p11 = pnand %p2852_p10, %p3021_p4  ;;  %p2860_p2 = por %p2859_p1, %p2858_p0 }
  0x4b   : > { %v562_v23 = vsub.f32 %v3096_v7, %v558_v15 }
  0x4c   : > { %v564_v17 = vmul.f32 %v3104_v13, %v561_v14  ;;  %v567_v5 = vmul.f32 %v3115_v22, %v561_v14  ;;  %v580_v18 = vmul.f32 %v3118_v24, %v561_v14  ;;  %v609_v55 = vmul.f32 %v608_v44, %v561_v14  ;;  %p2854_p13 = pneg %p2853_p11 }
  0x4d   : > { %v565_v29 = vmul.f32 %v3104_v13, %v562_v23  ;;  %v568_v26 = vmul.f32 %v3115_v22, %v562_v23  ;;  %v581_v30 = vmul.f32 %v3118_v24, %v562_v23  ;;  %v610_v9 = vmul.f32 %v608_v44, %v562_v23 }
  0x4e   : > { %v2589_v25 = vrot.slane %v567_v5, 9  ;;  %v2591_v27 = vrot.slane %v580_v18, 10  ;;  %v592_v2 = vrot.slane %v580_v18, 7  ;;  %v2593_v28 = vrot.slane %v564_v17, 10  ;;  %p2861_p3 = pnand %p2860_p2, %p2854_p13 }
  0x4f   : > { %v2590_v36 = vrot.slane %v568_v26, 9  ;;  %v2592_v37 = vrot.slane %v581_v30, 10  ;;  %v593_v38 = vrot.slane %v581_v30, 7  ;;  %v2594_v39 = vrot.slane %v565_v29, 10 }
  0x50   : > { %v577_v33 = vadd.f32 %v2589_v25, %v564_v17  ;;  %v596_v34 = vsub.f32 %v567_v5, %v592_v2  ;;  %v606_v35 = vsub.f32 %v580_v18, %v2593_v28  ;;  %v816_v14 = vsub.s32 5, %v3181_v47 }
  0x51   : > { %v578_v45 = vadd.f32 %v2590_v36, %v565_v29  ;;  %v597_v46 = vsub.f32 %v568_v26, %v593_v38  ;;  %v607_v19 = vsub.f32 %v581_v30, %v2594_v39  ;;  %v3194_v5 = vsub.s32 0, %v3181_v47 }
  0x52   : > { %v590_v40 = vadd.f32 %v2591_v27, %v577_v33  ;;  %v614_v41 = vmul.f32 %v3094_v6, %v596_v34  ;;  %v632_v42 = vmul.f32 %v3094_v6, %v606_v35  ;;  %v672_v18 = vsub.f32 0.0, %v670_v62 }
  0x53   : > { %v591_v52 = vadd.f32 %v2592_v37, %v578_v45  ;;  %v615_v53 = vmul.f32 %v3094_v6, %v597_v46  ;;  %v633_v54 = vmul.f32 %v3094_v6, %v607_v19  ;;  %v2801_v11 = vpop.eup %2800  ;;  %v753_v37 = vand.u32 2147483648, %v3166_v20 }
  0x54   : > { %v611_v48 = vmul.f32 %v590_v40, %v3104_v13  ;;  %v2595_v49 = vrot.slane %v614_v41, 10  ;;  %v630_v51 = vmul.f32 %v590_v40, %v3115_v22  ;;  %v749_v23 = vmul.f32 %v2801_v11, %v3166_v20 }
  0x55   : > { %v612_v57 = vmul.f32 %v591_v52, %v3104_v13  ;;  %v2596_v59 = vrot.slane %v615_v53, 10  ;;  %v631_v61 = vmul.f32 %v591_v52, %v3115_v22  ;;  %v742_v33 = vmul.f32 %v672_v18, %v672_v18 }
  0x56   : > { %v624_v56 = vadd.f32 %v2595_v49, %v611_v48  ;;  %v634_v32 = vadd.f32 %v632_v42, %v630_v51  ;;  %v3220_v38 = vsub.s32 1, %v3181_v47  ;;  %v751_v39 = vsel %vm750_vm1, %v3166_v20, %v749_v23 }
  0x57   : > { %v625_v10 = vadd.f32 %v2596_v59, %v612_v57  ;;  %v635_v1 = vadd.f32 %v633_v54, %v631_v61  ;;  %v3232_v43 = vsub.f32 %v742_v33, %v3166_v20  ;;  %v746_v44 = vmul.f32 2.0, %v672_v18 }
  0x58   : > { %v626_v63 = vmul.f32 2.0, %v624_v56  ;;  %v636_v3 = vmul.f32 2.0, %v634_v32  ;;  %4394 = vst [vmem:[#allocation19_spill] sm:$0xff] %v3220_v38  ;;  %v754_v46 = vsel %vm752_vm2, %v753_v37, %v751_v39  ;;  %v649_v54 = vmul.f32 %v3115_v22, %v3096_v7 }
  0x59   : > { %v627_v16 = vmul.f32 2.0, %v625_v10  ;;  %v637_v17 = vmul.f32 2.0, %v635_v1  ;;  %v3249_v20 = vmul.f32 %v754_v46, %v746_v44  ;;  %v3253_v52 = vrot.slane %v3232_v43, %v3190_v4 }
  0x5a   : > { %v628_v12 = vadd.f32 %v626_v63, %v609_v55  ;;  %v640_v15 = vrot.slane %v636_v3, 7  ;;  %v2598_v32 = vrot.slane %v649_v54, 9  ;;  %v647_v3 = vmul.f32 %v3104_v13, %v3096_v7 }
  0x5b   : > { %v629_v2 = vadd.f32 %v627_v16, %v610_v9  ;;  %v641_v28 = vrot.slane %v637_v17, 7  ;;  %4395 = vst [vmem:[#allocation20_spill] sm:$0xff] %v3253_v52  ;;  %v3270_v61 = vrot.slane %v3249_v20, %v3190_v4  ;;  %v3273_v22 = vrot.slane %v3253_v52, 7 }
  0x5c   : > { %v644_v25 = vadd.f32 %v640_v15, %v609_v55  ;;  %v3197_v27 = vrot.slane %v628_v12, %v3190_v4  ;;  %v3207_v31 = vrot.slane %v628_v12, %v3194_v5  ;;  %v661_v55 = vmul.f32 %v3118_v24, %v3096_v7 }
  0x5d   : > { %v645_v30 = vadd.f32 %v641_v28, %v610_v9  ;;  %v3216_v36 = vrot.slane %v629_v2, %v3190_v4  ;;  %v3276_v62 = vrot.slane %v629_v2, %v3194_v5  ;;  %v675_v10 = vmul.f32 %v3094_v6, %v3096_v7 }
  0x5e   : > { %4391 = vst [vmem:[#allocation16_spill] sm:$0xff] %v3197_v27  ;;  %v3200_v29 = vrot.slane %v644_v25, %v816_v14  ;;  %v3203_v26 = vrot.slane %v3197_v27, 7  ;;  %4392 = vst [vmem:[#allocation17_spill] sm:$0xff] %v3207_v31  ;;  %v3229_v42 = vrot.slane %v3207_v31, 7  ;;  %v3241_v48 = vrot.slane %v644_v25, %v3220_v38 }
  0x5f   : > { %4393 = vst [vmem:[#allocation18_spill] sm:$0xff] %v3216_v36  ;;  %v3226_v41 = vrot.slane %v645_v30, %v816_v14  ;;  %v3235_v45 = vrot.slane %v3216_v36, 7  ;;  %4396 = vst [vmem:[#allocation21_spill] sm:$0xff] %v3276_v62  ;;  %v3279_v63 = vrot.slane %v645_v30, %v3220_v38  ;;  %v2602_v9 = vrot.slane %v661_v55, 9 }
  0x60   : > { %v3210_v34 = vand.u32 2147483647, %v3203_v26  ;;  %v3213_v35 = vand.u32 2147483647, %v3200_v29  ;;  %v3247_v51 = vand.u32 2147483647, %v3229_v42  ;;  %v659_v14 = vadd.f32 %v2598_v32, %v647_v3 }
  0x61   : > { %v3238_v19 = vand.u32 2147483647, %v3226_v41  ;;  %v3244_v49 = vand.u32 2147483647, %v3235_v45  ;;  %v3262_v56 = vand.u32 2147483647, %v3241_v48  ;;  %vm949_vm14 = vcmp.ne.f32.partialorder %v3203_v26, %v3203_v26 }
  0x62   : > { %v918_v40 = vmax.f32 %v3210_v34, %v3213_v35  ;;  %v917_v57 = vmin.f32 %v3210_v34, %v3213_v35  ;;  %v693_v1 = vsub.f32 0.0, %v3096_v7  ;;  %v3287_v12 = vrot.slane %v3276_v62, 7 }
  0x63   : > { %v1012_v53 = vmax.f32 %v3244_v49, %v3238_v19  ;;  %v871_v59 = vmax.f32 %v3247_v51, %v3262_v56  ;;  %v3290_v15 = vand.u32 2147483647, %v3279_v63  ;;  %v2600_v16 = vrot.slane %v661_v55, 10 }
  0x64   : > { %2802 = vrcp.f32 %v918_v40  ;;  %v3295_v13 = vand.u32 2147483647, %v3273_v22  ;;  %v3298_v18 = vand.u32 2147483647, %v3270_v61  ;;  %v3301_v6 = vand.u32 2147483647, %v3287_v12 }
  0x65   : > { %2804 = vrcp.f32 %v1012_v53  ;;  %vm1133_vm3 = vcmp.lt.s32.totalorder %v3273_v22, 0  ;;  %v683_v7 = vadd.f32 %v2602_v9, %v675_v10  ;;  %v2604_v25 = vrot.slane %v649_v54, 10 }
  0x66   : > { %2806 = vrcp.f32 %v871_v59  ;;  %v3305_v2 = vadd.s32 8, %v3181_v47  ;;  %v1011_v23 = vmin.f32 %v3244_v49, %v3238_v19  ;;  %v2608_v30 = vrot.slane %v647_v3, 10 }
  0x67   : > { %v965_v33 = vmax.f32 %v3301_v6, %v3290_v15  ;;  %vm4374_vm4 = vcmp.lt.f32.partialorder %v3273_v22, 0.0  ;;  %v671_v37 = vadd.f32 %v2600_v16, %v659_v14  ;;  %v695_v39 = vmul.f32 %v693_v1, %v3118_v24 }
  0x68   : > { %4397 = vst [vmem:[#allocation22_spill] sm:$0xff] %v3305_v2  ;;  %v1106_v44 = vmax.f32 %v3295_v13, %v3298_v18  ;;  %v3321_v46 = vsel %vm1133_vm3, 3.1415927, %v4351_v0  ;;  %v4349_v53 = vmov 0.7853982   ;;  %v691_v24 = vsub.f32 %v683_v7, %v2604_v25 }
  0x69   : > { %v3326_v55 = vsel %vm4374_vm4, 2.3561945, %v4349_v53  ;;  %2808 = vrcp.f32 %v965_v33  ;;  %v2606_v59 = vrot.slane %v675_v10, 9  ;;  %vm942_vm5 = vcmp.lt.f32.partialorder %v3203_v26, 0.0 }
  0x6a   : > { %2810 = vrcp.f32 %v1106_v44  ;;  %v3333_v14 = vsub.f32 0.0, %v671_v37  ;;  %v2612_v21 = vrot.slane %v675_v10, 10  ;;  %v733_v25 = vmul.f32 %v691_v24, %v691_v24 }
  0x6b   : > { %v705_v16 = vadd.f32 %v2606_v59, %v695_v39  ;;  %v3348_v37 = vrot.slane %v3249_v20, %v3194_v5  ;;  %vm945_vm6 = vcmp.lt.s32.totalorder %v3203_v26, 0  ;;  %vm1039_vm7 = vcmp.lt.s32.totalorder %v3235_v45, 0 }
  0x6c   : > { %vm4376_vm8 = vcmp.lt.f32.partialorder %v3235_v45, 0.0  ;;  %vm898_vm9 = vcmp.lt.s32.totalorder %v3229_v42, 0  ;;  %vm4375_vm10 = vcmp.lt.f32.partialorder %v3229_v42, 0.0  ;;  %vm939_vm13 = vcmp.gt.f32.partialorder %v3213_v35, %v3210_v34 }
  0x6d   : > { %4399 = vst [vmem:[#allocation24_spill] sm:$0xff] %v3348_v37  ;;  %v3369_v59 = vand.u32 2147483647, %v3348_v37  ;;  %vm950_vm15 = vcmp.ne.f32.partialorder %v3200_v29, %v3200_v29  ;;  %vm955_vm0 = vcmp.eq.s32.totalorder %v3210_v34, inf  ;;  %vm956_vm1 = vcmp.eq.s32.totalorder %v3213_v35, inf }
  0x6e   : > { %v2803_v11 = vpop.eup %2802  ;;  %vm947_vm2 = vcmp.eq.f32.partialorder %v3200_v29, 0.0  ;;  %vm992_vm3 = vcmp.lt.s32.totalorder %v3287_v12, 0  ;;  %vm1050_vm4 = vcmp.eq.s32.totalorder %v3238_v19, inf }
  0x6f   : > { %v3292_v17 = vmul.f32 %v2803_v11, %v917_v57  ;;  %v2805_v32 = vpop.eup %2804  ;;  %v870_v57 = vmin.f32 %v3247_v51, %v3262_v56  ;;  %v2610_v11 = vrot.slane %v647_v3, 9  ;;  %v3344_v3 = vrot.slane %v3232_v43, %v3194_v5  ;;  %4401 = vst [vmem:[#allocation26_spill] sm:$0xff] %v3369_v59 }
  0x70   : > { %v3330_v1 = vmul.f32 %v2805_v32, %v1011_v23  ;;  %v2807_v53 = vpop.eup %2806  ;;  %v715_v23 = vadd.f32 %v2608_v30, %v705_v16  ;;  %v1105_v30 = vmin.f32 %v3295_v13, %v3298_v18 }
  0x71   : > { %v3309_v28 = vmul.f32 %v3292_v17, %v3292_v17  ;;  %v723_v7 = vsub.f32 %v649_v54, %v2610_v11  ;;  %v3340_v33 = vmul.f32 %v2807_v53, %v870_v57  ;;  %4398 = vst [vmem:[#allocation23_spill] sm:$0xff] %v3344_v3  ;;  %v3359_v43 = vrot.slane %v3344_v3, 7 }
  0x72   : > { %v3338_v52 = vmul.f32 %v3330_v1, %v3330_v1  ;;  %v735_v44 = vmul.f32 %v715_v23, %v715_v23  ;;  %v4402_v11 = vmov 0.0  }
  0x73   : > { %v922_v40 = vmul.f32 0.002785687, %v3309_v28  ;;  %v3354_v54 = vmul.f32 %v3340_v33, %v3340_v33  ;;  %4400 = vst [vmem:[#allocation25_spill] sm:$0xff] %v3359_v43  ;;  %v3366_v24 = vand.u32 2147483647, %v3359_v43 }
  0x74   : > { %v1016_v39 = vmul.f32 0.002785687, %v3338_v52  ;;  %v737_v57 = vadd.f32 %v735_v44, %v733_v25  ;;  %v3374_v16 = vsel %vm945_vm6, 3.1415927, %v4402_v11  ;;  %v2809_v25 = vpop.eup %2808  ;;  %v3424_v27 = vsel %vm898_vm9, 3.1415927, %v4402_v11 }
  0x75   : > { %v923_v9 = vadd.f32 -0.015866, %v922_v40  ;;  %v731_v40 = vadd.f32 %v2612_v21, %v723_v7  ;;  %v875_v21 = vmul.f32 0.002785687, %v3354_v54  ;;  %v4403_v7 = vmov 0.7853982  }
  0x76   : > { %v1017_v53 = vadd.f32 -0.015866, %v1016_v39  ;;  %v3379_v23 = vsel %vm942_vm5, 2.3561945, %v4403_v7  ;;  %vm1033_vm6 = vcmp.gt.f32.partialorder %v3238_v19, %v3244_v49  ;;  %vm1044_vm9 = vcmp.ne.f32.partialorder %v3226_v41, %v3226_v41 }
  0x77   : > { %v924_v0 = vmul.f32 %v923_v9, %v3309_v28  ;;  %v739_v32 = vmul.f32 %v731_v40, %v731_v40  ;;  %v876_v44 = vadd.f32 -0.015866, %v875_v21 }
  0x79   : > { %v925_v10 = vadd.f32 0.04247222, %v924_v0  ;;  %v964_v0 = vmin.f32 %v3301_v6, %v3290_v15  ;;  %v3384_v3 = vadd.f32 %v739_v32, %v737_v57  ;;  %v877_v50 = vmul.f32 %v876_v44, %v3354_v54 }
  0x7a   : > { %v3417_v44 = vsel %vm4376_vm8, 2.3561945, %v4403_v7  ;;  %vm900_vm8 = vcmp.eq.f32.partialorder %v3241_v48, 0.0 }
  0x7b   : > { %v926_v20 = vmul.f32 %v925_v10, %v3309_v28  ;;  %v1018_v10 = vmul.f32 %v1017_v53, %v3338_v52  ;;  %v3388_v58 = vmul.f32 %v2809_v25, %v964_v0  ;;  %2812 = vrsqrt.f32 %v3384_v3 }
  0x7c   : > { %v1059_v53 = vmax.f32 %v3366_v24, %v3369_v59  ;;  %v3403_v0 = vsel %vm1039_vm7, 3.1415927, %v4402_v11  ;;  %vm757_vm11 = vcmp.eq.f32.partialorder %v3384_v3, inf  ;;  %vm759_vm12 = vcmp.eq.f32.partialorder %v3384_v3, 0.0 }
  0x7d   : > { %v927_v9 = vadd.f32 -0.074975304, %v926_v20  ;;  %v2811_v20 = vpop.eup %2810  ;;  %v1019_v60 = vadd.f32 0.04247222, %v1018_v10  ;;  %v3400_v57 = vmul.f32 %v3388_v58, %v3388_v58  ;;  %v743_v10 = vmul.f32 %v3333_v14, %v3333_v14 }
  0x7e   : > { %v3391_v36 = vmul.f32 %v2811_v20, %v1105_v30  ;;  %2814 = vrcp.f32 %v1059_v53  ;;  %v3433_v53 = vsel %vm4375_vm10, 2.3561945, %v4403_v7  ;;  %v760_v47 = vand.u32 2147483648, %v3384_v3  ;;  %vm3546_vm10 = vmor %vm949_vm14, %vm950_vm15 }
  0x7f   : > { %v928_v8 = vmul.f32 %v927_v9, %v3309_v28  ;;  %v1020_v32 = vmul.f32 %v1019_v60, %v3338_v52  ;;  %v878_v9 = vadd.f32 0.04247222, %v877_v50  ;;  %v969_v25 = vmul.f32 0.002785687, %v3400_v57  ;;  %vm957_vm14 = vmand %vm955_vm0, %vm956_vm1 }
  0x80   : > { %v3407_v30 = vmul.f32 %v3391_v36, %v3391_v36  ;;  %v3427_v43 = vsub.f32 %v743_v10, %v3384_v3  ;;  %vm1043_vm7 = vcmp.ne.f32.partialorder %v3235_v45, %v3235_v45  ;;  %vm997_vm15 = vcmp.ne.f32.partialorder %v3279_v63, %v3279_v63 }
  0x81   : > { %v929_v21 = vadd.f32 0.1064488, %v928_v8  ;;  %v1021_v60 = vadd.f32 -0.074975304, %v1020_v32  ;;  %v879_v50 = vmul.f32 %v878_v9, %v3354_v54  ;;  %vm1127_vm0 = vcmp.gt.f32.partialorder %v3298_v18, %v3295_v13  ;;  %vm3600_vm1 = vmor %vm1043_vm7, %vm1044_vm9 }
  0x82   : > { %v1110_v20 = vmul.f32 0.002785687, %v3407_v30  ;;  %vm4412_vm9 = vcmp.gt.f32.partialorder %v3262_v56, %v3247_v51 }
  0x83   : > { %v930_v8 = vmul.f32 %v929_v21, %v3309_v28  ;;  %v1022_v39 = vmul.f32 %v1021_v60, %v3338_v52  ;;  %v970_v21 = vadd.f32 -0.015866, %v969_v25  ;;  %v880_v32 = vadd.f32 -0.074975304, %v879_v50 }
  0x84   : > { %v1111_v62 = vadd.f32 -0.015866, %v1110_v20  ;;  %v747_v50 = vmul.f32 2.0, %v3333_v14 }
  0x85   : > { %v931_v40 = vadd.f32 -0.14207031, %v930_v8  ;;  %v1023_v9 = vadd.f32 0.1064488, %v1022_v39  ;;  %v971_v8 = vmul.f32 %v970_v21, %v3400_v57  ;;  %v881_v60 = vmul.f32 %v880_v32, %v3354_v54  ;;  %v2813_v39 = vpop.eup %2812 }
  0x86   : > { %v1112_v25 = vmul.f32 %v1111_v62, %v3407_v30  ;;  %v3445_v21 = vrot.slane %v3427_v43, %v3190_v4 }
  0x87   : > { %v932_v37 = vmul.f32 %v931_v40, %v3309_v28  ;;  %v1024_v20 = vmul.f32 %v1023_v9, %v3338_v52  ;;  %v972_v40 = vadd.f32 0.04247222, %v971_v8  ;;  %v882_v31 = vadd.f32 0.1064488, %v881_v60 }
  0x88   : > { %v1113_v2 = vadd.f32 0.04247222, %v1112_v25  ;;  %v1058_v25 = vmin.f32 %v3366_v24, %v3369_v59 }
  0x89   : > { %v933_v10 = vadd.f32 0.19993454, %v932_v37  ;;  %v1025_v14 = vadd.f32 -0.14207031, %v1024_v20  ;;  %v973_v32 = vmul.f32 %v972_v40, %v3400_v57  ;;  %v756_v37 = vmul.f32 %v2813_v39, %v3384_v3  ;;  %v2815_v39 = vpop.eup %2814 }
  0x8a   : > { %v883_v9 = vmul.f32 %v882_v31, %v3354_v54  ;;  %v1114_v60 = vmul.f32 %v1113_v2, %v3407_v30 }
  0x8b   : > { %v934_v62 = vmul.f32 %v933_v10, %v3309_v28  ;;  %v1026_v10 = vmul.f32 %v1025_v14, %v3338_v52  ;;  %v974_v20 = vadd.f32 -0.074975304, %v973_v32  ;;  %v758_v40 = vsel %vm757_vm11, %v3384_v3, %v756_v37 }
  0x8c   : > { %v884_v31 = vadd.f32 -0.14207031, %v883_v9  ;;  %v1115_v2 = vadd.f32 -0.074975304, %v1114_v60  ;;  %v761_v8 = vsel %vm759_vm12, %v760_v47, %v758_v40  ;;  %v3480_v3 = vmul.f32 %v2815_v39, %v1058_v25 }
  0x8d   : > { %v935_v38 = vadd.f32 -0.33333147, %v934_v62  ;;  %v3468_v62 = vrot.slane %v3445_v21, 7  ;;  %v1027_v32 = vadd.f32 0.19993454, %v1026_v10  ;;  %v975_v37 = vmul.f32 %v974_v20, %v3400_v57 }
  0x8e   : > { %v3474_v59 = vmul.f32 %v761_v8, %v747_v50  ;;  %v885_v9 = vmul.f32 %v884_v31, %v3354_v54  ;;  %v1116_v47 = vmul.f32 %v1115_v2, %v3407_v30  ;;  %vm989_vm11 = vcmp.lt.f32.partialorder %v3287_v12, 0.0 }
  0x8f   : > { %v936_v14 = vmul.f32 %v935_v38, %v3309_v28  ;;  %v1028_v28 = vmul.f32 %v1027_v32, %v3338_v52  ;;  %v976_v60 = vadd.f32 0.1064488, %v975_v37  ;;  %v3491_v20 = vand.u32 2147483647, %v3468_v62 }
  0x90   : > { %v3486_v10 = vrot.slane %v3474_v59, %v3190_v4  ;;  %v886_v50 = vadd.f32 0.19993454, %v885_v9  ;;  %v1117_v8 = vadd.f32 0.1064488, %v1116_v47  ;;  %vm1049_vm12 = vcmp.eq.s32.totalorder %v3244_v49, inf }
  0x91   : > { %v937_v38 = vmul.f32 %v936_v14, %v3292_v17  ;;  %v1029_v40 = vadd.f32 -0.33333147, %v1028_v28  ;;  %v977_v39 = vmul.f32 %v976_v60, %v3400_v57  ;;  %v3513_v9 = vmul.f32 %v3480_v3, %v3480_v3  ;;  %vm3617_vm7 = vmand %vm1049_vm12, %vm1050_vm4 }
  0x92   : > { %v3496_v31 = vand.u32 2147483647, %v3486_v10  ;;  %v887_v4 = vmul.f32 %v886_v50, %v3354_v54  ;;  %vm4413_vm4 = vcmp.eq.f32.partialorder %v3226_v41, 0.0  ;;  %vm1143_vm12 = vcmp.eq.s32.totalorder %v3295_v13, inf }
  0x93   : > { %v938_v25 = vadd.f32 %v937_v38, %v3292_v17  ;;  %v1118_v17 = vmul.f32 %v1117_v8, %v3407_v30  ;;  %v1030_v32 = vmul.f32 %v1029_v40, %v3338_v52  ;;  %v978_v37 = vadd.f32 -0.14207031, %v977_v39 }
  0x94   : > { %v888_v47 = vadd.f32 -0.33333147, %v887_v4  ;;  %v3519_v38 = vsel %vm992_vm3, 3.1415927, %v4402_v11  ;;  %v1200_v28 = vmax.f32 %v3491_v20, %v3496_v31  ;;  %v3534_v40 = vrot.slane %v3427_v43, %v3194_v5 }
  0x95   : > { %v940_v14 = vsub.f32 1.5707964, %v938_v25  ;;  %v1119_v52 = vadd.f32 -0.14207031, %v1118_v17  ;;  %v1031_v50 = vmul.f32 %v1030_v32, %v3330_v1  ;;  %v979_v8 = vmul.f32 %v978_v37, %v3400_v57 }
  0x96   : > { %v889_v4 = vmul.f32 %v888_v47, %v3354_v54  ;;  %vm908_vm3 = vcmp.eq.s32.totalorder %v3247_v51, inf  ;;  %2816 = vrcp.f32 %v1200_v28  ;;  %v1063_v32 = vmul.f32 0.002785687, %v3513_v9 }
  0x97   : > { %v941_v60 = vsel %vm939_vm13, %v940_v14, %v938_v25  ;;  %vm909_vm13 = vcmp.eq.s32.totalorder %v3262_v56, inf  ;;  %v1120_v25 = vmul.f32 %v1119_v52, %v3407_v30  ;;  %v1032_v43 = vadd.f32 %v1031_v50, %v3330_v1 }
  0x98   : > { %v943_v39 = vsub.f32 3.1415927, %v941_v60  ;;  %v980_v54 = vadd.f32 0.19993454, %v979_v8  ;;  %v3555_v14 = vsel %vm989_vm11, 2.3561945, %v4403_v7  ;;  %v890_v1 = vmul.f32 %v889_v4, %v3340_v33 }
  0x99   : > { %v1121_v47 = vadd.f32 0.19993454, %v1120_v25  ;;  %v1148_v52 = vand.u32 2147483648, %v3270_v61  ;;  %v1034_v50 = vsub.f32 1.5707964, %v1032_v43 }
  0x9a   : > { %v944_v37 = vsel %vm942_vm5, %v943_v39, %v941_v60  ;;  %v981_v8 = vmul.f32 %v980_v54, %v3400_v57  ;;  %v1064_v2 = vadd.f32 -0.015866, %v1063_v32  ;;  %v891_v35 = vadd.f32 %v890_v1, %v3340_v33 }
  0x9b   : > { %v948_v28 = vsel %vm947_vm2, %v3374_v16, %v944_v37  ;;  %vm986_vm5 = vcmp.gt.f32.partialorder %v3290_v15, %v3301_v6  ;;  %v1122_v34 = vmul.f32 %v1121_v47, %v3407_v30  ;;  %v3577_v60 = vrot.slane %v3534_v40, 7 }
  0x9c   : > { %v952_v26 = vsel %vm3546_vm10, nan, %v948_v28  ;;  %v1035_v16 = vsel %vm1033_vm6, %v1034_v50, %v1032_v43  ;;  %v982_v4 = vadd.f32 -0.33333147, %v981_v8  ;;  %v1065_v25 = vmul.f32 %v1064_v2, %v3513_v9 }
  0x9d   : > { %v958_v39 = vsel %vm957_vm14, %v3379_v23, %v952_v26  ;;  %v1037_v54 = vsub.f32 3.1415927, %v1035_v16  ;;  %v893_v33 = vsub.f32 1.5707964, %v891_v35  ;;  %vm996_vm10 = vcmp.ne.f32.partialorder %v3287_v12, %v3287_v12 }
  0x9e   : > { %v959_v17 = vand.u32 2147483647, %v958_v39  ;;  %v3592_v23 = vrot.slane %v3474_v59, %v3194_v5  ;;  %v983_v43 = vmul.f32 %v982_v4, %v3400_v57  ;;  %v1123_v32 = vadd.f32 -0.33333147, %v1122_v34 }
  0x9f   : > { %v1199_v59 = vmin.f32 %v3491_v20, %v3496_v31  ;;  %v1066_v37 = vadd.f32 0.04247222, %v1065_v25  ;;  %v4408_v1 = vand.u32 2147483648, %v3200_v29  ;;  %vm4409_vm14 = vcmp.lt.f32.partialorder %v3235_v45, 0.0 }
  0xa0   : > { %v1038_v28 = vsel %vm4409_vm14, %v1037_v54, %v1035_v16  ;;  %v894_v50 = vsel %vm4412_vm9, %v893_v33, %v891_v35  ;;  %v3630_v45 = vand.u32 2147483647, %v3577_v60  ;;  %v984_v8 = vmul.f32 %v983_v43, %v3388_v58  ;;  %v2817_v35 = vpop.eup %2816 }
  0xa1   : > { %v961_v47 = vor.u32 %v4408_v1, %v959_v17  ;;  %v1042_v19 = vsel %vm4413_vm4, %v3403_v0, %v1038_v28  ;;  %v896_v49 = vsub.f32 3.1415927, %v894_v50  ;;  %v1124_v26 = vmul.f32 %v1123_v32, %v3407_v30 }
  0xa2   : > { %vm1144_vm9 = vcmp.eq.s32.totalorder %v3298_v18, inf  ;;  %v1046_v39 = vsel %vm3600_vm1, nan, %v1042_v19  ;;  %vm4414_vm6 = vcmp.ne.f32.partialorder %v3241_v48, %v3241_v48  ;;  %vm4415_vm4 = vcmp.ne.f32.partialorder %v3229_v42, %v3229_v42 }
  0xa3   : > { %v1245_v34 = vmul.f32 0.15915494, %v961_v47  ;;  %vm3647_vm14 = vmor %vm4415_vm4, %vm4414_vm6  ;;  %vm1135_vm2 = vcmp.eq.f32.partialorder %v3270_v61, 0.0  ;;  %v1067_v30 = vmul.f32 %v1066_v37, %v3513_v9  ;;  %v3654_v16 = vand.u32 2147483647, %v3592_v23 }
  0xa4   : > { %v1052_v4 = vsel %vm3617_vm7, %v3417_v44, %v1046_v39  ;;  %vm4418_vm1 = vcmp.lt.f32.partialorder %v3229_v42, 0.0  ;;  %vm910_vm6 = vmand %vm908_vm3, %vm909_vm13  ;;  %v985_v17 = vadd.f32 %v984_v8, %v3388_v58  ;;  %v1125_v54 = vmul.f32 %v1124_v26, %v3391_v36 }
  0xa5   : > { %v897_v25 = vsel %vm4418_vm1, %v896_v49, %v894_v50  ;;  %v1253_v33 = vadd.f32 0.5, %v1245_v34  ;;  %v1053_v2 = vand.u32 2147483647, %v1052_v4  ;;  %v3670_v32 = vmul.f32 %v2817_v35, %v1199_v59 }
  0xa6   : > { %v901_v43 = vsel %vm900_vm8, %v3424_v27, %v897_v25  ;;  %v987_v44 = vsub.f32 1.5707964, %v985_v17  ;;  %v1126_v56 = vadd.f32 %v1125_v54, %v3391_v36  ;;  %v1068_v51 = vadd.f32 -0.074975304, %v1067_v30  ;;  %vm3695_vm8 = vmor %vm996_vm10, %vm997_vm15 }
  0xa7   : > { %v905_v42 = vsel %vm3647_vm14, nan, %v901_v43  ;;  %v1261_v37 = vmul.f32 512.0, %v1253_v33  ;;  %v4419_v58 = vand.u32 2147483648, %v3226_v41  ;;  %v3680_v28 = vmul.f32 %v3670_v32, %v3670_v32  ;;  %vm1145_vm14 = vmand %vm1143_vm12, %vm1144_vm9 }
  0xa8   : > { %v911_v47 = vsel %vm910_vm6, %v3433_v53, %v905_v42  ;;  %v988_v59 = vsel %vm986_vm5, %v987_v44, %v985_v17  ;;  %v1128_v57 = vsub.f32 1.5707964, %v1126_v56  ;;  %v1069_v50 = vmul.f32 %v1068_v51, %v3513_v9 }
  0xa9   : > { %v1055_v1 = vor.u32 %v4419_v58, %v1053_v2  ;;  %v912_v27 = vand.u32 2147483647, %v911_v47  ;;  %v1269_v36 = vfloor.f32 %v1261_v37  ;;  %v990_v49 = vsub.f32 3.1415927, %v988_v59 }
  0xaa   : > { %v1204_v8 = vmul.f32 0.002785687, %v3680_v28  ;;  %v4420_v26 = vand.u32 2147483648, %v3241_v48  ;;  %v1129_v34 = vsel %vm1127_vm0, %v1128_v57, %v1126_v56  ;;  %v1070_v39 = vadd.f32 0.1064488, %v1069_v50 }
  0xab   : > { %v1247_v19 = vmul.f32 0.15915494, %v1055_v1  ;;  %v1153_v0 = vmax.f32 %v3630_v45, %v3654_v16  ;;  %v2714_v30 = vtrunc.f32 %v1269_v36  ;;  %v991_v25 = vsel %vm989_vm11, %v990_v49, %v988_v59 }
  0xac   : > { %v914_v53 = vor.u32 %v4420_v26, %v912_v27  ;;  %vm4423_vm3 = vcmp.eq.s32.totalorder %v3290_v15, inf  ;;  %vm4424_vm13 = vcmp.eq.s32.totalorder %v3301_v6, inf  ;;  %v1131_v17 = vsub.f32 3.1415927, %v1129_v34  ;;  %v4432_v26 = vld [vmem:[#allocation19_spill] sm:$0xff] }
  0xad   : > { %v1255_v4 = vadd.f32 0.5, %v1247_v19  ;;  %vm1004_vm5 = vmand %vm4424_vm13, %vm4423_vm3  ;;  %vm4425_vm10 = vcmp.eq.f32.partialorder %v3279_v63, 0.0  ;;  %vm4426_vm15 = vcmp.ne.f32.partialorder %v3270_v61, %v3270_v61  ;;  %vm4427_vm0 = vcmp.ne.f32.partialorder %v3273_v22, %v3273_v22 }
  0xae   : > { %v1244_v54 = vmul.f32 0.15915494, %v914_v53  ;;  %v995_v33 = vsel %vm4425_vm10, %v3519_v38, %v991_v25  ;;  %vm3719_vm7 = vmor %vm4427_vm0, %vm4426_vm15  ;;  %v1205_v15 = vadd.f32 -0.015866, %v1204_v8  ;;  %v1071_v6 = vmul.f32 %v1070_v39, %v3513_v9  ;;  %v4433_v25 = vld [vmem:[#allocation15_spill] sm:$0xff] }
  0xaf   : > { %v2715_v2 = vcvt.f32.s32 %v2714_v30  ;;  %v1263_v43 = vmul.f32 512.0, %v1255_v4  ;;  %v999_v42 = vsel %vm3695_vm8, nan, %v995_v33  ;;  %vm4430_vm11 = vcmp.lt.f32.partialorder %v3273_v22, 0.0 }
  0xb0   : > { %v1132_v38 = vsel %vm4430_vm11, %v1131_v17, %v1129_v34  ;;  %v1252_v44 = vadd.f32 0.5, %v1244_v54  ;;  %v1005_v56 = vsel %vm1004_vm5, %v3555_v14, %v999_v42  ;;  %v1206_v37 = vmul.f32 %v1205_v15, %v3680_v28  ;;  %v4434_v17 = vld [vmem:[#allocation22_spill] sm:$0xff] }
  0xb1   : > { %v1136_v51 = vsel %vm1135_vm2, %v3321_v46, %v1132_v38  ;;  %v3737_v58 = vand.u32 255, %v2715_v2  ;;  %v1271_v1 = vfloor.f32 %v1263_v43  ;;  %v1006_v47 = vand.u32 2147483647, %v1005_v56 }
  0xb2   : > { %v1140_v22 = vsel %vm3719_vm7, nan, %v1136_v51  ;;  %v1260_v18 = vmul.f32 512.0, %v1252_v44  ;;  %v1207_v27 = vadd.f32 0.04247222, %v1206_v37  ;;  %v1072_v59 = vadd.f32 -0.14207031, %v1071_v6 }
  0xb3   : > { %v1146_v13 = vsel %vm1145_vm14, %v3326_v55, %v1140_v22  ;;  %v1405_v14 = vand.u32 15, %v3737_v58  ;;  %v2718_v57 = vtrunc.f32 %v1271_v1  ;;  %v4431_v50 = vand.u32 2147483648, %v3279_v63  ;;  %v4435_v37 = vld [vmem:[#allocation17_spill] sm:$0xff] }
  0xb4   : > { %v1268_v36 = vfloor.f32 %v1260_v18  ;;  %v1147_v19 = vand.u32 2147483647, %v1146_v13  ;;  %v1208_v49 = vmul.f32 %v1207_v27, %v3680_v28  ;;  %v1073_v8 = vmul.f32 %v1072_v59, %v3513_v9 }
  0xb5   : > { %v1008_v46 = vor.u32 %v4431_v50, %v1006_v47  ;;  %v1419_v53 = vrot.slane %v1405_v14, %v4432_v26  ;;  %v2719_v35 = vcvt.f32.s32 %v2718_v57  ;;  %2818 = vrcp.f32 %v1153_v0 }
  0xb6   : > { %v2712_v55 = vtrunc.f32 %v1268_v36  ;;  %v1149_v39 = vor.u32 %v1148_v52, %v1147_v19  ;;  %v1209_v30 = vadd.f32 -0.074975304, %v1208_v49  ;;  %v1074_v4 = vadd.f32 0.19993454, %v1073_v8  ;;  %v4436_v36 = vld [vmem:[#allocation24_spill] sm:$0xff] }
  0xb7   : > { %v1246_v34 = vmul.f32 0.15915494, %v1008_v46  ;;  %vm1445_vm2 = vcmp.eq.s32.totalorder %v4433_v25, %v1419_v53  ;;  %vm1453_vm12 = vcmp.eq.s32.totalorder %v4434_v17, %v1419_v53  ;;  %v3752_v54 = vand.u32 255, %v2719_v35  ;;  %v4437_v53 = vld [vmem:[#allocation25_spill] sm:$0xff] }
  0xb8   : > { %vm2696_vm9 = vmpackc.low %vm1453_vm12, %vm1445_vm2  ;;  %v2713_v12 = vcvt.f32.s32 %v2712_v55  ;;  %v1249_v15 = vmul.f32 0.15915494, %v1149_v39  ;;  %v1210_v6 = vmul.f32 %v1209_v30, %v3680_v28  ;;  %v1075_v0 = vmul.f32 %v1074_v4, %v3513_v9  ;;  %v3792_v30 = vld [vmem:[%s4341_s3] sm:$0xff] }
  0xb9   : > { %v1254_v33 = vadd.f32 0.5, %v1246_v34  ;;  %v2938_v2 = vmov 1.0|1.0   ;;  %v1407_v52 = vand.u32 15, %v3752_v54  ;;  %v3763_v1 = vmul.f32 %v4435_v37, %v4435_v37  ;;  %v3820_v37 = vld [vmem:[%s4341_s3 + $0x8] sm:$0xff] }
  0xba   : > { %2697 = vmatprep.subr.msk.bf16.mxu0 %vm2696_vm9, %v2938_v2  ;;  %v3758_v42 = vand.u32 255, %v2713_v12  ;;  %v1257_v38 = vadd.f32 0.5, %v1249_v15  ;;  %v1211_v44 = vadd.f32 0.1064488, %v1210_v6  ;;  %v1076_v56 = vadd.f32 -0.33333147, %v1075_v0 }
  0xbb   : > { %v1262_v43 = vmul.f32 512.0, %v1254_v33  ;;  %v1427_v51 = vrot.slane %v1407_v52, %v4432_v26  ;;  %vm1620_vm4 = vcmask 130048   ;;  %v1152_v27 = vmin.f32 %v3630_v45, %v3654_v16  ;;  %v4438_v12 = vld [vmem:[#allocation26_spill] sm:$0xff] }
  0xbc   : > { %v1404_v22 = vand.u32 15, %v3758_v42  ;;  %v1265_v18 = vmul.f32 512.0, %v1257_v38  ;;  %v1212_v13 = vmul.f32 %v1211_v44, %v3680_v28  ;;  %v1077_v14 = vmul.f32 %v1076_v56, %v3513_v9 }
  0xbd   : > { %v1270_v47 = vfloor.f32 %v1262_v43  ;;  %vm1447_vm1 = vcmp.eq.s32.totalorder %v4433_v25, %v1427_v51  ;;  %vm1455_vm6 = vcmp.eq.s32.totalorder %v4434_v17, %v1427_v51  ;;  %vm1088_vm3 = vcmp.eq.f32.partialorder %v4436_v36, 0.0 }
  0xbe   : > { %vm2700_vm8 = vmpackc.low %vm1455_vm6, %vm1447_vm1  ;;  %v1415_v57 = vrot.slane %v1404_v22, %v4432_v26  ;;  %v1273_v50 = vfloor.f32 %v1265_v18  ;;  %v1213_v46 = vadd.f32 -0.14207031, %v1212_v13  ;;  %v1078_v8 = vmul.f32 %v1077_v14, %v3480_v3 }
  0xbf   : > { %v2716_v59 = vtrunc.f32 %v1270_v47  ;;  %v2819_v19 = vpop.eup %2818  ;;  %2701 = vmatprep.subr.msk.bf16.mxu1 %vm2700_vm8, %v2938_v2  ;;  %vm1083_vm13 = vcmp.lt.f32.partialorder %v4437_v53, 0.0  ;;  %vm1086_vm5 = vcmp.lt.s32.totalorder %v4437_v53, 0  ;;  %vm1090_vm7 = vcmp.ne.f32.partialorder %v4437_v53, %v4437_v53  ;;  %v3870_v53 = vld [vmem:[%s4341_s3 + $0x10] sm:$0xff] }
  0xc0   : > { %vm1444_vm10 = vcmp.eq.s32.totalorder %v4433_v25, %v1415_v57  ;;  %vm1452_vm15 = vcmp.eq.s32.totalorder %v4434_v17, %v1415_v57  ;;  %v2722_v9 = vtrunc.f32 %v1273_v50  ;;  %v1214_v35 = vmul.f32 %v1213_v46, %v3680_v28 }
  0xc1   : > { %v2717_v49 = vcvt.f32.s32 %v2716_v59  ;;  %vm2698_vm0 = vmpackc.low %vm1452_vm15, %vm1444_vm10  ;;  %v1079_v55 = vadd.f32 %v1078_v8, %v3480_v3  ;;  %v3786_v39 = vmul.f32 %v2819_v19, %v1152_v27  ;;  %vm1080_vm11 = vcmp.gt.f32.partialorder %v4438_v12, %v3366_v24 }
  0xc2   : > { %2699 = vmatpush1.bf16.msk.msra.mxu0 %vm2698_vm0, %v2938_v2  ;;  %v2723_v4 = vcvt.f32.s32 %v2722_v9  ;;  %v1215_v33 = vadd.f32 0.19993454, %v1214_v35  ;;  %vm1091_vm14 = vcmp.ne.f32.partialorder %v4436_v36, %v4436_v36  ;;  %vm1096_vm2 = vcmp.eq.s32.totalorder %v3366_v24, inf }
  0xc3   : > { %v3781_v34 = vand.u32 255, %v2717_v49  ;;  %v1081_v15 = vsub.f32 1.5707964, %v1079_v55  ;;  %v3802_v6 = vmul.f32 %v3786_v39, %v3786_v39  ;;  %vm1097_vm12 = vcmp.eq.s32.totalorder %v4438_v12, inf  ;;  %vm3829_vm9 = vmor %vm1090_vm7, %vm1091_vm14 }
  0xc4   : > { %v3804_v0 = vand.u32 255, %v2723_v4  ;;  %v1216_v52 = vmul.f32 %v1215_v33, %v3680_v28  ;;  %v1300_v43 = vmul.f32 %v3241_v48, %v3241_v48  ;;  %v1087_v56 = vsel %vm1086_vm5, 3.1415927, %v4402_v11  ;;  %vm3843_vm8 = vmand %vm1096_vm2, %vm1097_vm12 }
  0xc5   : > { %v1406_v3 = vand.u32 15, %v3781_v34  ;;  %2649 = vmatmul.mubr.msk.f32.vlgmr.msra.gmra.mrb[0].mxu0 %vm1620_vm4, %v3792_v30  ;;  %v1082_v44 = vsel %vm1080_vm11, %v1081_v15, %v1079_v55  ;;  %v1157_v51 = vmul.f32 0.002785687, %v3802_v6  ;;  %v1095_v27 = vsel %vm1083_vm13, 2.3561945, %v4403_v7 }
  0xc6   : > { %v1409_v47 = vand.u32 15, %v3804_v0  ;;  %v1217_v48 = vadd.f32 -0.33333147, %v1216_v52  ;;  %v1084_v22 = vsub.f32 3.1415927, %v1082_v44  ;;  %1709 = vmatprep.mubr.f32.mxu0 %v4402_v11  ;;  %v1316_v13 = vrot.slane %v1300_v43, 1 }
  0xc7   : > { %v1423_v38 = vrot.slane %v1406_v3, %v4432_v26  ;;  %v1158_v14 = vadd.f32 -0.015866, %v1157_v51  ;;  %v1101_v49 = vand.u32 2147483648, %v4436_v36  ;;  %v1396_v55 = vshra.s32 %v3758_v42, 4 }
  0xc8   : > { %v1435_v57 = vrot.slane %v1409_v47, %v4432_v26  ;;  %v1218_v50 = vmul.f32 %v1217_v48, %v3680_v28  ;;  %v1085_v46 = vsel %vm1083_vm13, %v1084_v22, %v1082_v44  ;;  %v3852_v19 = vadd.f32 %v1316_v13, %v3763_v1  ;;  %v3922_v22 = vld [vmem:[%s4341_s3 + $0x20] sm:$0xff] }
  0xc9   : > { %vm1446_vm1 = vcmp.eq.s32.totalorder %v4433_v25, %v1423_v38  ;;  %vm1454_vm6 = vcmp.eq.s32.totalorder %v4434_v17, %v1423_v38  ;;  %v1089_v24 = vsel %vm1088_vm3, %v1087_v56, %v1085_v46  ;;  %v1159_v8 = vmul.f32 %v1158_v14, %v3802_v6  ;;  %2650 = vmatmul.mubr.msk.f32.gmra.mrb[2].mxu0 %vm1620_vm4, %v3820_v37 }
  0xca   : > { %vm2702_vm5 = vmpackc.low %vm1454_vm6, %vm1446_vm1  ;;  %vm1449_vm10 = vcmp.eq.s32.totalorder %v4433_v25, %v1435_v57  ;;  %vm1457_vm15 = vcmp.eq.s32.totalorder %v4434_v17, %v1435_v57  ;;  %v1219_v28 = vmul.f32 %v1218_v50, %v3670_v32  ;;  %v1093_v1 = vsel %vm3829_vm9, nan, %v1089_v24  ;;  %1715 = vmatprep.mubr.f32.mxu0 %v4402_v11 }
  0xcb   : > { %2703 = vmatpush1.bf16.msk.msra.mxu1 %vm2702_vm5, %v2938_v2  ;;  %vm2704_vm3 = vmpackc.low %vm1457_vm15, %vm1449_vm10  ;;  %v1099_v9 = vsel %vm3843_vm8, %v1095_v27, %v1093_v1  ;;  %v1160_v35 = vadd.f32 0.04247222, %v1159_v8  ;;  %2820 = vrsqrt.f32 %v3852_v19  ;;  %vm1221_vm13 = vcmp.gt.f32.partialorder %v3496_v31, %v3491_v20 }
  0xcc   : > { %2705 = vmatprep.subr.msk.bf16.mxu0 %vm2704_vm3, %v2938_v2  ;;  %v1220_v4 = vadd.f32 %v1219_v28, %v3670_v32  ;;  %v1100_v33 = vand.u32 2147483647, %v1099_v9  ;;  %vm1224_vm0 = vcmp.lt.f32.partialorder %v3468_v62, 0.0  ;;  %vm1227_vm7 = vcmp.lt.s32.totalorder %v3468_v62, 0  ;;  %v3892_v32 = vld [vmem:[%s4341_s3 + $0x18] sm:$0xff] }
  0xcd   : > { %v1161_v12 = vmul.f32 %v1160_v35, %v3802_v6  ;;  %2651 = vmatmul.mubr.msk.f32.gmra.mrb[4].mxu0 %vm1620_vm4, %v3870_v53  ;;  %vm1231_vm11 = vcmp.ne.f32.partialorder %v3468_v62, %v3468_v62  ;;  %vm1232_vm14 = vcmp.ne.f32.partialorder %v3486_v10, %v3486_v10  ;;  %vm1237_vm2 = vcmp.eq.s32.totalorder %v3491_v20, inf }
  0xce   : > { %2659 = vmatmul.mubr.msk.f32.vlgmr.msra.gmra.mrb[0].mxu1 %vm1620_vm4, %v3792_v30  ;;  %v1222_v3 = vsub.f32 1.5707964, %v1220_v4  ;;  %v1102_v42 = vor.u32 %v1101_v49, %v1100_v33  ;;  %1721 = vmatprep.mubr.f32.mxu0 %v4402_v11  ;;  %vm1238_vm12 = vcmp.eq.s32.totalorder %v3496_v31, inf  ;;  %v3903_v38 = vrot.slane %v1396_v55, %v4432_v26  ;;  %vm3914_vm1 = vmor %vm1231_vm11, %vm1232_vm14  ;;  %v3950_v49 = vld [vmem:[%s4341_s3 + $0x28] sm:$0xff] }
  0xcf   : > { %1810 = vmatprep.mubr.f32.mxu1 %v4402_v11  ;;  %v1162_v15 = vadd.f32 -0.074975304, %v1161_v12  ;;  %v1228_v56 = vsel %vm1227_vm7, 3.1415927, %v4402_v11  ;;  %vm1229_vm9 = vcmp.eq.f32.partialorder %v3486_v10, 0.0  ;;  %vm1239_vm6 = vmand %vm1237_vm2, %vm1238_vm12  ;;  %v1242_v14 = vand.u32 2147483648, %v3486_v10 }
  0xd0   : > { %v1223_v52 = vsel %vm1221_vm13, %v1222_v3, %v1220_v4  ;;  %v1248_v43 = vmul.f32 0.15915494, %v1102_v42  ;;  %v1236_v13 = vsel %vm1224_vm0, 2.3561945, %v4403_v7  ;;  %vm1524_vm8 = vcmp.eq.s32.totalorder %v4433_v25, %v3903_v38 }
  0xd1   : > { %v1225_v44 = vsub.f32 3.1415927, %v1223_v52  ;;  %v1163_v51 = vmul.f32 %v1162_v15, %v3802_v6  ;;  %2652 = vmatmul.mubr.msk.f32.gmra.mrb[6].mxu0 %vm1620_vm4, %v3892_v32  ;;  %vm1342_vm5 = vcmp.eq.f32.partialorder %v3852_v19, inf  ;;  %v1345_v20 = vand.u32 2147483648, %v3852_v19 }
  0xd2   : > { %2660 = vmatmul.mubr.msk.f32.gmra.mrb[2].mxu1 %vm1620_vm4, %v3820_v37  ;;  %v1256_v48 = vadd.f32 0.5, %v1248_v43  ;;  %1727 = vmatprep.mubr.f32.mxu0 %v4402_v11  ;;  %vm1344_vm10 = vcmp.eq.f32.partialorder %v3852_v19, 0.0  ;;  %v2629_v12 = vsel %vm1524_vm8, 1.0, %v4402_v11  ;;  %vm1180_vm7 = vcmp.lt.s32.totalorder %v3577_v60, 0 }
  0xd3   : > { %1816 = vmatprep.mubr.f32.mxu1 %v4402_v11  ;;  %v1226_v18 = vsel %vm1224_vm0, %v1225_v44, %v1223_v52  ;;  %v1164_v27 = vadd.f32 0.1064488, %v1163_v51  ;;  %vm1174_vm0 = vcmp.gt.f32.partialorder %v3654_v16, %v3630_v45  ;;  %vm1177_vm11 = vcmp.lt.f32.partialorder %v3577_v60, 0.0 }
  0xd4   : > { %v1230_v59 = vsel %vm1229_vm9, %v1228_v56, %v1226_v18  ;;  %v1264_v57 = vmul.f32 512.0, %v1256_v48  ;;  %vm1184_vm14 = vcmp.ne.f32.partialorder %v3577_v60, %v3577_v60  ;;  %vm1185_vm2 = vcmp.ne.f32.partialorder %v3592_v23, %v3592_v23 }
  0xd5   : > { %v2821_v50 = vpop.eup %2820  ;;  %v1234_v62 = vsel %vm3914_vm1, nan, %v1230_v59  ;;  %v1165_v31 = vmul.f32 %v1164_v27, %v3802_v6  ;;  %2653 = vmatmul.mubr.msk.f32.gmra.mrb[8].mxu0 %vm1620_vm4, %v3922_v22  ;;  %vm1190_vm12 = vcmp.eq.s32.totalorder %v3630_v45, inf  ;;  %vm1191_vm9 = vcmp.eq.s32.totalorder %v3654_v16, inf }
  0xd6   : > { %2661 = vmatmul.mubr.msk.f32.gmra.mrb[4].mxu1 %vm1620_vm4, %v3870_v53  ;;  %v1240_v46 = vsel %vm1239_vm6, %v1236_v13, %v1234_v62  ;;  %v1272_v24 = vfloor.f32 %v1264_v57  ;;  %1733 = vmatprep.mubr.f32.mxu0 %v4402_v11  ;;  %v1341_v8 = vmul.f32 %v2821_v50, %v3852_v19  ;;  %vm1182_vm1 = vcmp.eq.f32.partialorder %v3592_v23, 0.0  ;;  %vm1186_vm6 = vmor %vm1184_vm14, %vm1185_vm2 }
  0xd7   : > { %1822 = vmatprep.mubr.f32.mxu1 %v4402_v11  ;;  %v1241_v28 = vand.u32 2147483647, %v1240_v46  ;;  %v1166_v1 = vadd.f32 -0.14207031, %v1165_v31  ;;  %v1181_v46 = vsel %vm1180_vm7, 3.1415927, %v4402_v11  ;;  %vm1192_vm8 = vmand %vm1190_vm12, %vm1191_vm9  ;;  %vm1532_vm7 = vcmp.eq.s32.totalorder %v4434_v17, %v3903_v38 }
  0xd8   : > { %v2720_v9 = vtrunc.f32 %v1272_v24  ;;  %v1343_v35 = vsel %vm1342_vm5, %v3852_v19, %v1341_v8  ;;  %v1189_v8 = vsel %vm1177_vm11, 2.3561945, %v4403_v7 }
  0xd9   : > { %v1243_v55 = vor.u32 %v1242_v14, %v1241_v28  ;;  %v1167_v4 = vmul.f32 %v1166_v1, %v3802_v6  ;;  %2654 = vmatmul.mubr.msk.f32.gmra.mrb[10].mxu0 %vm1620_vm4, %v3950_v49  ;;  %v1346_v33 = vsel %vm1344_vm10, %v1345_v20, %v1343_v35  ;;  %v1195_v28 = vand.u32 2147483648, %v3592_v23 }
  0xda   : > { %2662 = vmatmul.mubr.msk.f32.gmra.mrb[6].mxu1 %vm1620_vm4, %v3892_v32  ;;  %v2721_v3 = vcvt.f32.s32 %v2720_v9  ;;  %1905 = vmatprep.mubr.f32.mxu0 %v4402_v11  ;;  %v3967_v42 = vrot.slane %v1346_v33, %v3194_v5 }
  0xdb   : > { %1828 = vmatprep.mubr.f32.mxu1 %v4402_v11  ;;  %v1251_v19 = vmul.f32 0.15915494, %v1243_v55  ;;  %v1168_v15 = vadd.f32 0.19993454, %v1167_v4 }
  0xdc   : > { %v3969_v52 = vand.u32 255, %v2721_v3  ;;  %v3974_v43 = vmul.f32 %v2629_v12, %v3967_v42 }
  0xdd   : > { %v1259_v44 = vadd.f32 0.5, %v1251_v19  ;;  %v1169_v56 = vmul.f32 %v1168_v15, %v3802_v6 }
  0xde   : > { %2663 = vmatmul.mubr.msk.f32.gmra.mrb[8].mxu1 %vm1620_vm4, %v3922_v22  ;;  %v1408_v51 = vand.u32 15, %v3969_v52 }
  0xdf   : > { %1834 = vmatprep.mubr.f32.mxu1 %v4402_v11  ;;  %v1267_v47 = vmul.f32 512.0, %v1259_v44  ;;  %v1170_v48 = vadd.f32 -0.33333147, %v1169_v56  ;;  %v1302_v56 = vmul.f32 %v3279_v63, %v3279_v63  ;;  %v1301_v63 = vmul.f32 %v3200_v29, %v3200_v29 }
  0xe0   : > { %v1431_v18 = vrot.slane %v1408_v51, %v4432_v26  ;;  %v1397_v29 = vshra.s32 %v3737_v58, 4 }
  0xe1   : > { %v1275_v13 = vfloor.f32 %v1267_v47  ;;  %v1171_v27 = vmul.f32 %v1170_v48, %v3802_v6  ;;  %v4447_v47 = vld [vmem:[#allocation18_spill] sm:$0xff] }
  0xe2   : > { %2664 = vmatmul.mubr.msk.f32.gmra.mrb[10].mxu1 %vm1620_vm4, %v3950_v49  ;;  %vm1448_vm15 = vcmp.eq.s32.totalorder %v4433_v25, %v1431_v18  ;;  %vm1456_vm3 = vcmp.eq.s32.totalorder %v4434_v17, %v1431_v18  ;;  %v1295_v48 = vmul.f32 %v4447_v47, %v4447_v47  ;;  %v1398_v18 = vshra.s32 %v3781_v34, 4  ;;  %v4449_v47 = vld [vmem:[#allocation12_spill] sm:$0xff] }
  0xe3   : > { %2006 = vmatprep.mubr.f32.mxu1 %v4402_v11  ;;  %v2726_v59 = vtrunc.f32 %v1275_v13  ;;  %vm2706_vm13 = vmpackc.low %vm1456_vm3, %vm1448_vm15  ;;  %v1172_v14 = vmul.f32 %v1171_v27, %v3786_v39  ;;  %v1317_v13 = vrot.slane %v1301_v63, 1  ;;  %v2637_v27 = vsel %vm1532_vm7, 1.0, %v4402_v11  ;;  %v4450_v63 = vld [vmem:[#allocation13_spill] sm:$0xff] }
  0xe4   : > { %2707 = vmatpush1.bf16.msk.msra.mxu0 %vm2706_vm13, %v2938_v2 }
  0xe5   : > { %v2727_v57 = vcvt.f32.s32 %v2726_v59  ;;  %v1173_v50 = vadd.f32 %v1172_v14, %v3786_v39 }
  0xe7   : > { %v3991_v62 = vand.u32 255, %v2727_v57  ;;  %v1175_v6 = vsub.f32 1.5707964, %v1173_v50  ;;  %2669 = vmatmul.mubr.msk.f32.vlgmr.msra.gmra.mrb[12].mxu0 %vm1620_vm4, %v3792_v30  ;;  %v4068_v57 = vmul.f32 %v2637_v27, %v3967_v42 }
  0xe8   : > { %1911 = vmatprep.mubr.f32.mxu0 %v4402_v11 }
  0xe9   : > { %v1411_v39 = vand.u32 15, %v3991_v62  ;;  %v1176_v31 = vsel %vm1174_vm0, %v1175_v6, %v1173_v50  ;;  %v1503_v50 = vrot.slane %v1398_v18, %v4432_v26  ;;  %v4451_v18 = vld [vmem:[#allocation14_spill] sm:$0xff] }
  0xea   : > { %v1178_v20 = vsub.f32 3.1415927, %v1176_v31 }
  0xeb   : > { %v1443_v24 = vrot.slane %v1411_v39, %v4432_v26  ;;  %2670 = vmatmul.mubr.msk.f32.gmra.mrb[14].mxu0 %vm1620_vm4, %v3820_v37  ;;  %vm1526_vm14 = vcmp.eq.s32.totalorder %v4433_v25, %v1503_v50  ;;  %v1499_v39 = vrot.slane %v1397_v29, %v4432_v26  ;;  %vm1534_vm2 = vcmp.eq.s32.totalorder %v4434_v17, %v1503_v50 }
  0xec   : > { %v1179_v60 = vsel %vm1177_vm11, %v1178_v20, %v1176_v31  ;;  %1917 = vmatprep.mubr.f32.mxu0 %v4402_v11  ;;  %v2631_v58 = vsel %vm1526_vm14, 1.0, %v4402_v11  ;;  %v2939_v50 = vmov 1966171168  }
  0xed   : > { %vm1451_vm5 = vcmp.eq.s32.totalorder %v4433_v25, %v1443_v24  ;;  %vm1459_vm10 = vcmp.eq.s32.totalorder %v4434_v17, %v1443_v24  ;;  %v1183_v45 = vsel %vm1182_vm1, %v1181_v46, %v1179_v60  ;;  %vm1525_vm12 = vcmp.eq.s32.totalorder %v4433_v25, %v1499_v39 }
  0xee   : > { %vm2708_vm15 = vmpackc.low %vm1459_vm10, %vm1451_vm5  ;;  %v1187_v16 = vsel %vm1186_vm6, nan, %v1183_v45  ;;  %vm1533_vm10 = vcmp.eq.s32.totalorder %v4434_v17, %v1499_v39  ;;  %v512_v29 = vunpack.c.l.s4 %v2939_v50 }
  0xef   : > { %2709 = vmatprep.subr.msk.bf16.mxu1 %vm2708_vm15, %v2938_v2  ;;  %v1193_v1 = vsel %vm1192_vm8, %v1189_v8, %v1187_v16  ;;  %2671 = vmatmul.mubr.msk.f32.gmra.mrb[16].mxu0 %vm1620_vm4, %v3870_v53 }
  0xf0   : > { %v1194_v9 = vand.u32 2147483647, %v1193_v1  ;;  %1923 = vmatprep.mubr.f32.mxu0 %v4402_v11  ;;  %v513_v39 = vunpack.c.0.s8 %v512_v29 }
  0xf2   : > { %v1196_v7 = vor.u32 %v1195_v28, %v1194_v9 }
  0xf3   : > { %2672 = vmatmul.mubr.msk.f32.gmra.mrb[18].mxu0 %vm1620_vm4, %v3892_v32 }
  0xf4   : > { %v1250_v35 = vmul.f32 0.15915494, %v1196_v7  ;;  %1929 = vmatprep.mubr.f32.mxu0 %v4402_v11 }
  0xf6   : > { %v1258_v55 = vadd.f32 0.5, %v1250_v35 }
  0xf7   : > { %2673 = vmatmul.mubr.msk.f32.gmra.mrb[20].mxu0 %vm1620_vm4, %v3922_v22 }
  0xf8   : > { %v1266_v4 = vmul.f32 512.0, %v1258_v55  ;;  %1935 = vmatprep.mubr.f32.mxu0 %v4402_v11  ;;  %v2630_v55 = vsel %vm1525_vm12, 1.0, %v4402_v11 }
  0xfa   : > { %v1274_v33 = vfloor.f32 %v1266_v4 }
  0xfb   : > { %2674 = vmatmul.mubr.msk.f32.gmra.mrb[22].mxu0 %vm1620_vm4, %v3950_v49 }
  0xfc   : > { %v2724_v12 = vtrunc.f32 %v1274_v33  ;;  %v2638_v33 = vsel %vm1533_vm10, 1.0, %v4402_v11 }
  0xfe   : > { %v2725_v3 = vcvt.f32.s32 %v2724_v12 }
 0x100   : > { %v4027_v19 = vand.u32 255, %v2725_v3 }
 0x102   : > { %v1410_v15 = vand.u32 15, %v4027_v19 }
 0x104   : > { %v1439_v44 = vrot.slane %v1410_v15, %v4432_v26 }
 0x106   : > { %vm1450_vm3 = vcmp.eq.s32.totalorder %v4433_v25, %v1439_v44  ;;  %vm1458_vm13 = vcmp.eq.s32.totalorder %v4434_v17, %v1439_v44 }
 0x107   : > { %vm2710_vm0 = vmpackc.low %vm1458_vm13, %vm1450_vm3 }
 0x108   : > { %2711 = vmatpush1.bf16.msk.msra.mxu1 %vm2710_vm0, %v2938_v2  ;;  %v4445_v2 = vld [vmem:[#allocation21_spill] sm:$0xff] }
 0x10b   : > { %2679 = vmatmul.mubr.msk.f32.vlgmr.msra.gmra.mrb[12].mxu1 %vm1620_vm4, %v3792_v30  ;;  %v1294_v30 = vmul.f32 %v4445_v2, %v4445_v2 }
 0x10c   : > { %2012 = vmatprep.mubr.f32.mxu1 %v4402_v11 }
 0x10f   : > { %2680 = vmatmul.mubr.msk.f32.gmra.mrb[14].mxu1 %vm1620_vm4, %v3820_v37  ;;  %v1318_v37 = vrot.slane %v1302_v56, 1 }
 0x110   : > { %2018 = vmatprep.mubr.f32.mxu1 %v4402_v11 }
 0x113   : > { %2681 = vmatmul.mubr.msk.f32.gmra.mrb[16].mxu1 %vm1620_vm4, %v3870_v53  ;;  %v1334_v53 = vadd.f32 %v1318_v37, %v1294_v30 }
 0x114   : > { %2024 = vmatprep.mubr.f32.mxu1 %v4402_v11 }
 0x115   : > { %2822 = vrsqrt.f32 %v1334_v53  ;;  %v1359_v34 = vand.u32 2147483648, %v1334_v53  ;;  %vm1358_vm11 = vcmp.eq.f32.partialorder %v1334_v53, 0.0 }
 0x117   : > { %2682 = vmatmul.mubr.msk.f32.gmra.mrb[18].mxu1 %vm1620_vm4, %v3892_v32  ;;  %v4446_v32 = vld [vmem:[#allocation16_spill] sm:$0xff] }
 0x118   : > { %2030 = vmatprep.mubr.f32.mxu1 %v4402_v11  ;;  %v1293_v51 = vmul.f32 %v4446_v32, %v4446_v32  ;;  %v4448_v32 = vld [vmem:[#allocation11_spill] sm:$0xff] }
 0x11a   : > { %v1333_v59 = vadd.f32 %v1317_v13, %v1293_v51  ;;  %v493_v51 = vsub.f32 0.0, %v4448_v32  ;;  %v496_v13 = vsub.f32 0.0, %v4451_v18 }
 0x11b   : > { %2683 = vmatmul.mubr.msk.f32.gmra.mrb[20].mxu1 %vm1620_vm4, %v3922_v22  ;;  %v1303_v22 = vmul.f32 %v3226_v41, %v3226_v41  ;;  %v1399_v41 = vshra.s32 %v3752_v54, 4  ;;  %v2639_v54 = vsel %vm1534_vm2, 1.0, %v4402_v11 }
 0x11c   : > { %2036 = vmatprep.mubr.f32.mxu1 %v4402_v11  ;;  %2824 = vrsqrt.f32 %v1333_v59  ;;  %vm1349_vm1 = vcmp.eq.f32.partialorder %v1333_v59, inf  ;;  %v1352_v8 = vand.u32 2147483648, %v1333_v59  ;;  %vm1351_vm6 = vcmp.eq.f32.partialorder %v1333_v59, 0.0 }
 0x11d   : > { %v1507_v42 = vrot.slane %v1399_v41, %v4432_v26 }
 0x11f   : > { %2684 = vmatmul.mubr.msk.f32.gmra.mrb[22].mxu1 %vm1620_vm4, %v3950_v49  ;;  %v1319_v49 = vrot.slane %v1303_v22, 1  ;;  %v2823_v38 = vpop.eup %2822  ;;  %vm1356_vm4 = vcmp.eq.f32.partialorder %v1334_v53, inf  ;;  %vm1527_vm9 = vcmp.eq.s32.totalorder %v4433_v25, %v1507_v42  ;;  %vm1535_vm15 = vcmp.eq.s32.totalorder %v4434_v17, %v1507_v42 }
 0x120   : > { %v1355_v6 = vmul.f32 %v2823_v38, %v1334_v53  ;;  %v2632_v15 = vsel %vm1527_vm9, 1.0, %v4402_v11  ;;  %v2640_v44 = vsel %vm1535_vm15, 1.0, %v4402_v11  ;;  %v495_v22 = vsub.f32 0.0, %v4450_v63 }
 0x121   : > { %v1335_v14 = vadd.f32 %v1319_v49, %v1295_v48  ;;  %v494_v48 = vsub.f32 0.0, %v4449_v47  ;;  %v497_v49 = vmax.f32 %v493_v51, 0.0  ;;  %v1304_v42 = vmul.f32 %v4436_v36, %v4436_v36 }
 0x122   : > { %v1357_v31 = vsel %vm1356_vm4, %v1334_v53, %v1355_v6 }
 0x123   : > { %2826 = vrsqrt.f32 %v1335_v14  ;;  %v1360_v20 = vsel %vm1358_vm11, %v1359_v34, %v1357_v31  ;;  %vm1363_vm8 = vcmp.eq.f32.partialorder %v1335_v14, inf  ;;  %v1366_v1 = vand.u32 2147483648, %v1335_v14 }
 0x124   : > { %v1583_v46 = vrot.slane %v1360_v20, %v3194_v5  ;;  %vm1365_vm5 = vcmp.eq.f32.partialorder %v1335_v14, 0.0  ;;  %v498_v27 = vmax.f32 %v494_v48, 0.0  ;;  %v501_v41 = vmin.f32 %v497_v49, 1.0 }
 0x126   : > { %v2825_v24 = vpop.eup %2824  ;;  %v4082_v60 = vmul.f32 %v2631_v58, %v1583_v46  ;;  %v4084_v45 = vmul.f32 %v2639_v54, %v1583_v46  ;;  %v502_v38 = vmin.f32 %v498_v27, 1.0  ;;  %v516_v58 = vsub.s32 %v513_v39, %v4433_v25 }
 0x127   : > { %v1348_v28 = vmul.f32 %v2825_v24, %v1333_v59  ;;  %v4452_v24 = vld [vmem:[#allocation23_spill] sm:$0xff] }
 0x128   : > { %v509_v31 = vcombine.low %v501_v41, %v502_v38 }
 0x129   : > { %v1350_v7 = vsel %vm1349_vm1, %v1333_v59, %v1348_v28  ;;  %v499_v59 = vmax.f32 %v495_v22, 0.0  ;;  %v1305_v28 = vmul.f32 %v3270_v61, %v3270_v61 }
 0x12a   : > { %v1353_v35 = vsel %vm1351_vm6, %v1352_v8, %v1350_v7  ;;  %v517_v54 = vrot.slane %v509_v31, %v516_v58  ;;  %v1296_v8 = vmul.f32 %v4452_v24, %v4452_v24  ;;  %v4453_v7 = vlaneseq }
 0x12b   : > { %v1579_v12 = vrot.slane %v1353_v35, %v3194_v5  ;;  %v503_v34 = vmin.f32 %v499_v59, 1.0  ;;  %v4454_v35 = vld [vmem:[#allocation20_spill] sm:$0xff] }
 0x12c   : > { %vm536_vm3 = vcmp.lt.s32.totalorder %v4453_v7, 512 }
 0x12d   : > { %v2827_v16 = vpop.eup %2826  ;;  %v4098_v30 = vmul.f32 %v2630_v55, %v1579_v12  ;;  %v4100_v56 = vmul.f32 %v2638_v33, %v1579_v12  ;;  %v1297_v55 = vmul.f32 %v4454_v35, %v4454_v35 }
 0x12e   : > { %v1362_v9 = vmul.f32 %v2827_v16, %v1335_v14  ;;  %v1320_v16 = vrot.slane %v1304_v42, 1 }
 0x130   : > { %v1364_v4 = vsel %vm1363_vm8, %v1335_v14, %v1362_v9  ;;  %v500_v14 = vmax.f32 %v496_v13, 0.0  ;;  %v1336_v36 = vadd.f32 %v1320_v16, %v1296_v8 }
 0x131   : > { %v1367_v3 = vsel %vm1365_vm5, %v1366_v1, %v1364_v4  ;;  %v1321_v4 = vrot.slane %v1305_v28, 1 }
 0x132   : > { %v1587_v2 = vrot.slane %v1367_v3, %v3194_v5  ;;  %v504_v6 = vmin.f32 %v500_v14, 1.0 }
 0x134   : > { %v4102_v37 = vmul.f32 %v2632_v15, %v1587_v2  ;;  %v4104_v53 = vmul.f32 %v2640_v44, %v1587_v2  ;;  %v510_v20 = vcombine.low %v503_v34, %v504_v6 }
 0x136   : > { %v524_v46 = vrot.slane %v510_v20, %v516_v58 }
 0x138   : > { %v525_v1 = vcombine.low %v517_v54, %v524_v46 }
 0x13a   : > { %v532_v9 = vrot.slane %v525_v1, %v516_v58 }
 0x13c   : > { %538 = vst.msk [vmem:[%s343_s12] sm:$0xf] %vm536_vm3, %v532_v9 }
 0x13d   : > { %2864 = shalt.err (!%p2861_p3)
}
 0x13e   : > { %s2865_s8 = scalar_lea.hbm %s4123_s18, 64  ;;  %s2869_s9 = scalar_lea.hbm %s4342_s4, 128 }
 0x13f   : > { %p2866_p5 = scmp.ne.s32.totalorder %s4123_s18, %s2865_s8  ;;  %p2870_p9 = scmp.lt.u32.totalorder %s4123_s18, %s4342_s4 }
 0x140   : > { %p2871_p12 = scmp.lt.u32.totalorder %s2869_s9, %s2865_s8  ;;  %p2873_p11 = scmp.lt.u32.totalorder %s2865_s8, %s4123_s18 }
 0x141   : > { %p2867_p6 = pnand %p2866_p5, %p3021_p4 }
 0x142   : > { %p2872_p10 = por %p2871_p12, %p2870_p9 }
 0x143   : > { %p2868_p7 = pneg %p2867_p6 }
 0x144   : > { %p2874_p13 = por %p2873_p11, %p2872_p10 }
 0x146   : > { %p2875_p0 = pnand %p2874_p13, %p2868_p7 }
 0x148   : > { %2878 = shalt.err (!%p2875_p0)
}
 0x149   : > { %2732 = dma.vmem_to_hbm [thread:$0]  (%p3021_p4), %s2342_s23, 64, %s4123_s18, %s2298_s19   ;;  %2828 = vrsqrt.f32 %v1336_v36  ;;  %v1337_v61 = vadd.f32 %v1321_v4, %v1297_v55  ;;  %v1400_v3 = vshra.s32 %v3969_v52, 4  ;;  %vm1370_vm13 = vcmp.eq.f32.partialorder %v1336_v36, inf }
 0x14a   : > { %v1373_v47 = vand.u32 2147483648, %v1336_v36  ;;  %vm1372_vm0 = vcmp.eq.f32.partialorder %v1336_v36, 0.0  ;;  %v1401_v13 = vshra.s32 %v3804_v0, 4  ;;  %v4155_v14 = vmul.f32 %v3592_v23, %v3592_v23  ;;  %s416_s12 = scalar_lea.vmem %s4344_s6, %s3066_s15  ;;  %s4307_s17 = scalar_lea.vmem %s4345_s7, %s3066_s15 }
 0x14b   : > { %2830 = vrsqrt.f32 %v1337_v61  ;;  %v4148_v63 = vrot.slane %v1400_v3, %v4432_v26  ;;  %vm1377_vm7 = vcmp.eq.f32.partialorder %v1337_v61, inf  ;;  %v4159_v50 = vmul.f32 %v3486_v10, %v3486_v10 }
 0x14c   : > { %vm1379_vm11 = vcmp.eq.f32.partialorder %v1337_v61, 0.0  ;;  %v1380_v0 = vand.u32 2147483648, %v1337_v61  ;;  %v4165_v23 = vrot.slane %v1401_v13, %v4432_v26  ;;  %v4179_v16 = vmul.f32 %v3534_v40, %v3534_v40 }
 0x14d   : > { %vm1528_vm4 = vcmp.eq.s32.totalorder %v4433_v25, %v4148_v63  ;;  %v1322_v9 = vrot.slane %v4155_v14, 1  ;;  %v1323_v40 = vrot.slane %v4159_v50, 1  ;;  %vm1536_vm2 = vcmp.eq.s32.totalorder %v4434_v17, %v4148_v63 }
 0x14e   : > { %v2633_v8 = vsel %vm1528_vm4, 1.0, %v4402_v11  ;;  %vm1529_vm14 = vcmp.eq.s32.totalorder %v4433_v25, %v4165_v23  ;;  %vm2259_vm12 = vcmask 1040384   ;;  %vm1537_vm9 = vcmp.eq.s32.totalorder %v4434_v17, %v4165_v23 }
 0x14f   : > { %vm2268_vm1 = vcmask 1041408  }
 0x153   : > { %v2829_v33 = vpop.eup %2828 }
 0x154   : > { %v1369_v12 = vmul.f32 %v2829_v33, %v1336_v36 }
 0x155   : > { %v2831_v44 = vpop.eup %2830 }
 0x156   : > { %v1371_v48 = vsel %vm1370_vm13, %v1336_v36, %v1369_v12  ;;  %v1376_v18 = vmul.f32 %v2831_v44, %v1337_v61  ;;  %v4185_v36 = vmul.f32 %v3445_v21, %v3445_v21 }
 0x157   : > { %v1374_v59 = vsel %vm1372_vm0, %v1373_v47, %v1371_v48 }
 0x158   : > { %v1378_v42 = vsel %vm1377_vm7, %v1337_v61, %v1376_v18  ;;  %v4170_v54 = vrot.slane %v1374_v59, %v3194_v5  ;;  %v2634_v18 = vsel %vm1529_vm14, 1.0, %v4402_v11 }
 0x159   : > { %v1381_v7 = vsel %vm1379_vm11, %v1380_v0, %v1378_v42 }
 0x15a   : > { %v4194_v44 = vmul.f32 %v2633_v8, %v4170_v54  ;;  %v2641_v8 = vsel %vm1536_vm2, 1.0, %v4402_v11 }
 0x198   : > { %v1705_v15 = vpop.f32.mrb[0].mxu0 }
 0x199   : > { %v2043_v2 = vmul.f32 %v1705_v15, %v3974_v43  ;;  %v1707_v32 = vpop.f32.mrb[1].mxu0 }
 0x19a   : > { %v2044_v51 = vmul.f32 %v1707_v32, %v4098_v30 }
 0x19c   : > { %v1711_v22 = vpop.f32.mrb[2].mxu0 }
 0x19d   : > { %v2051_v52 = vmul.f32 %v1711_v22, %v4068_v57  ;;  %v1713_v49 = vpop.f32.mrb[3].mxu0 }
 0x19e   : > { %v2052_v27 = vmul.f32 %v1713_v49, %v4100_v56 }
 0x19f   : > { %v2059_v41 = vadd.f32 %v2051_v52, %v2043_v2 }
 0x1a0   : > { %v2066_v6 = vadd.f32 %v2052_v27, %v2044_v51  ;;  %v1717_v39 = vpop.f32.mrb[4].mxu0  ;;  %v4198_v51 = vrot.slane %v1381_v7, %v3194_v5 }
 0x1a1   : > { %v1806_v29 = vpop.f32.mrb[0].mxu1  ;;  %v2060_v10 = vrot.slane %v2059_v41, 4  ;;  %v2115_v20 = vmul.f32 %v1717_v39, %v3974_v43  ;;  %v1719_v58 = vpop.f32.mrb[5].mxu0 }
 0x1a2   : > { %v2045_v38 = vmul.f32 %v1806_v29, %v4082_v60  ;;  %v1808_v34 = vpop.f32.mrb[1].mxu1  ;;  %v2067_v46 = vrot.slane %v2066_v6, 4  ;;  %v2116_v24 = vmul.f32 %v1719_v58, %v4098_v30 }
 0x1a3   : > { %v2046_v31 = vmul.f32 %v1808_v34, %v4102_v37  ;;  %v2061_v28 = vadd.f32 %v2060_v10, %v2059_v41  ;;  %v4207_v10 = vmul.f32 %v2634_v18, %v4198_v51 }
 0x1a4   : > { %v2068_v55 = vadd.f32 %v2067_v46, %v2066_v6  ;;  %v1723_v33 = vpop.f32.mrb[6].mxu0 }
 0x1a5   : > { %v1812_v1 = vpop.f32.mrb[2].mxu1  ;;  %v2062_v12 = vrot.slane %v2061_v28, 2  ;;  %v2123_v61 = vmul.f32 %v1723_v33, %v4068_v57  ;;  %v1725_v15 = vpop.f32.mrb[7].mxu0 }
 0x1a6   : > { %v2053_v35 = vmul.f32 %v1812_v1, %v4084_v45  ;;  %v1814_v4 = vpop.f32.mrb[3].mxu1  ;;  %v2069_v2 = vrot.slane %v2068_v55, 2  ;;  %v2124_v32 = vmul.f32 %v1725_v15, %v4100_v56 }
 0x1a7   : > { %v2054_v3 = vmul.f32 %v1814_v4, %v4104_v53  ;;  %v2131_v22 = vadd.f32 %v2123_v61, %v2115_v20  ;;  %v2063_v13 = vadd.f32 %v2062_v12, %v2061_v28 }
 0x1a8   : > { %v2073_v21 = vadd.f32 %v2053_v35, %v2045_v38  ;;  %v2138_v59 = vadd.f32 %v2124_v32, %v2116_v24  ;;  %v1729_v29 = vpop.f32.mrb[8].mxu0  ;;  %v2070_v41 = vadd.f32 %v2069_v2, %v2068_v55 }
 0x1a9   : > { %v2080_v47 = vadd.f32 %v2054_v3, %v2046_v31  ;;  %v1818_v48 = vpop.f32.mrb[4].mxu1  ;;  %v2132_v34 = vrot.slane %v2131_v22, 4  ;;  %v1731_v6 = vpop.f32.mrb[9].mxu0  ;;  %v2187_v31 = vmul.f32 %v1729_v29, %v3974_v43  ;;  %v2064_v28 = vrot.slane %v2063_v13, 1 }
 0x1aa   : > { %v2074_v52 = vrot.slane %v2073_v21, 4  ;;  %v2117_v49 = vmul.f32 %v1818_v48, %v4082_v60  ;;  %v1820_v27 = vpop.f32.mrb[5].mxu1  ;;  %v2139_v42 = vrot.slane %v2138_v59, 4  ;;  %v2188_v24 = vmul.f32 %v1731_v6, %v4098_v30 }
 0x1ab   : > { %v2081_v0 = vrot.slane %v2080_v47, 4  ;;  %v2118_v38 = vmul.f32 %v1820_v27, %v4102_v37  ;;  %v2133_v58 = vadd.f32 %v2132_v34, %v2131_v22  ;;  %v2071_v4 = vrot.slane %v2070_v41, 1 }
 0x1ac   : > { %v2075_v39 = vadd.f32 %v2074_v52, %v2073_v21  ;;  %v2140_v35 = vadd.f32 %v2139_v42, %v2138_v59  ;;  %v1735_v43 = vpop.f32.mrb[10].mxu0  ;;  %v2065_v18 = vadd.f32 %v2064_v28, %v2063_v13 }
 0x1ad   : > { %v2082_v20 = vadd.f32 %v2081_v0, %v2080_v47  ;;  %v1824_v46 = vpop.f32.mrb[6].mxu1  ;;  %v2134_v33 = vrot.slane %v2133_v58, 2  ;;  %v2195_v3 = vmul.f32 %v1735_v43, %v4068_v57  ;;  %v1737_v61 = vpop.f32.mrb[11].mxu0  ;;  %v2072_v29 = vadd.f32 %v2071_v4, %v2070_v41 }
 0x1ae   : > { %v2076_v1 = vrot.slane %v2075_v39, 2  ;;  %v2125_v7 = vmul.f32 %v1824_v46, %v4084_v45  ;;  %v1826_v55 = vpop.f32.mrb[7].mxu1  ;;  %v2141_v21 = vrot.slane %v2140_v35, 2  ;;  %v2196_v63 = vmul.f32 %v1737_v61, %v4100_v56 }
 0x1af   : > { %v2126_v12 = vmul.f32 %v1826_v55, %v4104_v53  ;;  %v2083_v30 = vrot.slane %v2082_v20, 2  ;;  %v2135_v32 = vadd.f32 %v2134_v33, %v2133_v58  ;;  %v2203_v22 = vadd.f32 %v2195_v3, %v2187_v31 }
 0x1b0   : > { %v2145_v15 = vadd.f32 %v2125_v7, %v2117_v49  ;;  %v2077_v2 = vadd.f32 %v2076_v1, %v2075_v39  ;;  %v2142_v27 = vadd.f32 %v2141_v21, %v2140_v35  ;;  %v2210_v13 = vadd.f32 %v2196_v63, %v2188_v24 }
 0x1b1   : > { %v2152_v47 = vadd.f32 %v2126_v12, %v2118_v38  ;;  %v1830_v48 = vpop.f32.mrb[8].mxu1  ;;  %v2136_v0 = vrot.slane %v2135_v32, 1  ;;  %v2084_v56 = vadd.f32 %v2083_v30, %v2082_v20  ;;  %v2204_v46 = vrot.slane %v2203_v22, 4 }
 0x1b2   : > { %v2146_v52 = vrot.slane %v2145_v15, 4  ;;  %v2189_v59 = vmul.f32 %v1830_v48, %v4082_v60  ;;  %v1832_v57 = vpop.f32.mrb[9].mxu1  ;;  %v2143_v42 = vrot.slane %v2142_v27, 1  ;;  %v2078_v39 = vrot.slane %v2077_v2, 1 }
 0x1b3   : > { %v2153_v49 = vrot.slane %v2152_v47, 4  ;;  %v2190_v34 = vmul.f32 %v1832_v57, %v4102_v37  ;;  %v2137_v58 = vadd.f32 %v2136_v0, %v2135_v32  ;;  %v2205_v7 = vadd.f32 %v2204_v46, %v2203_v22 }
 0x1b4   : > { %v2147_v6 = vadd.f32 %v2146_v52, %v2145_v15  ;;  %v2144_v1 = vadd.f32 %v2143_v42, %v2142_v27  ;;  %v2211_v37 = vrot.slane %v2210_v13, 4  ;;  %v2085_v3 = vrot.slane %v2084_v56, 1 }
 0x1b5   : > { %v2154_v38 = vadd.f32 %v2153_v49, %v2152_v47  ;;  %v1836_v31 = vpop.f32.mrb[10].mxu1  ;;  %v2260_v35 = vsel %vm2259_vm12, %v2065_v18, %v2137_v58  ;;  %v2206_v33 = vrot.slane %v2205_v7, 2  ;;  %v2079_v22 = vadd.f32 %v2078_v39, %v2077_v2 }
 0x1b6   : > { %v2148_v28 = vrot.slane %v2147_v6, 2  ;;  %v2197_v60 = vmul.f32 %v1836_v31, %v4084_v45  ;;  %v1838_v41 = vpop.f32.mrb[11].mxu1  ;;  %v2261_v4 = vsel %vm2259_vm12, %v2072_v29, %v2144_v1  ;;  %v2212_v24 = vadd.f32 %v2211_v37, %v2210_v13 }
 0x1b7   : > { %v2155_v55 = vrot.slane %v2154_v38, 2  ;;  %v2198_v20 = vmul.f32 %v1838_v41, %v4104_v53  ;;  %v2207_v21 = vadd.f32 %v2206_v33, %v2205_v7  ;;  %v4227_v45 = vmul.f32 %v2641_v8, %v4170_v54 }
 0x1b8   : > { %v2149_v43 = vadd.f32 %v2148_v28, %v2147_v6  ;;  %v2217_v12 = vadd.f32 %v2197_v60, %v2189_v59  ;;  %v2213_v47 = vrot.slane %v2212_v24, 2  ;;  %v2642_v53 = vsel %vm1537_vm9, 1.0, %v4402_v11 }
 0x1b9   : > { %v2156_v61 = vadd.f32 %v2155_v55, %v2154_v38  ;;  %v2224_v30 = vadd.f32 %v2198_v20, %v2190_v34  ;;  %v2208_v52 = vrot.slane %v2207_v21, 1  ;;  %v2086_v57 = vadd.f32 %v2085_v3, %v2084_v56 }
 0x1ba   : > { %v2150_v15 = vrot.slane %v2149_v43, 1  ;;  %v2218_v63 = vrot.slane %v2217_v12, 4  ;;  %v1907_v59 = vpop.f32.mrb[12].mxu0  ;;  %v2214_v0 = vadd.f32 %v2213_v47, %v2212_v24  ;;  %v4235_v42 = vmul.f32 %v2642_v53, %v4198_v51 }
 0x1bb   : > { %v2157_v32 = vrot.slane %v2156_v61, 1  ;;  %v2225_v48 = vrot.slane %v2224_v30, 4  ;;  %v1909_v34 = vpop.f32.mrb[13].mxu0  ;;  %v2209_v8 = vadd.f32 %v2208_v52, %v2207_v21  ;;  %v4242_v56 = vadd.f32 %v1322_v9, %v4179_v16 }
 0x1bc   : > { %v2151_v18 = vadd.f32 %v2150_v15, %v2149_v43  ;;  %v2219_v27 = vadd.f32 %v2218_v63, %v2217_v12  ;;  %v2215_v2 = vrot.slane %v2214_v0, 1  ;;  %v4247_v38 = vadd.f32 %v1323_v40, %v4185_v36 }
 0x1bd   : > { %v2158_v29 = vadd.f32 %v2157_v32, %v2156_v61  ;;  %v2226_v49 = vadd.f32 %v2225_v48, %v2224_v30  ;;  %v2269_v39 = vsel %vm2268_vm1, %v2260_v35, %v2209_v8  ;;  %v2047_v28 = vmul.f32 %v1907_v59, %v4194_v44 }
 0x1be   : > { %v2262_v54 = vsel %vm2259_vm12, %v2079_v22, %v2151_v18  ;;  %v2220_v6 = vrot.slane %v2219_v27, 2  ;;  %v1913_v51 = vpop.f32.mrb[14].mxu0  ;;  %v2216_v31 = vadd.f32 %v2215_v2, %v2214_v0  ;;  %v2048_v41 = vmul.f32 %v1909_v34, %v4207_v10 }
 0x1bf   : > { %v2263_v23 = vsel %vm2259_vm12, %v2086_v57, %v2158_v29  ;;  %v2227_v46 = vrot.slane %v2226_v49, 2  ;;  %v2055_v1 = vmul.f32 %v1913_v51, %v4227_v45  ;;  %v1915_v7 = vpop.f32.mrb[15].mxu0  ;;  %2832 = vrsqrt.f32 %v4242_v56 }
 0x1c0   : > { %v2221_v58 = vadd.f32 %v2220_v6, %v2219_v27  ;;  %v2056_v14 = vmul.f32 %v1915_v7, %v4235_v42  ;;  %v2270_v50 = vsel %vm2268_vm1, %v2261_v4, %v2216_v31  ;;  %2834 = vrsqrt.f32 %v4247_v38 }
 0x1c1   : > { %v2228_v13 = vadd.f32 %v2227_v46, %v2226_v49  ;;  %v2087_v9 = vadd.f32 %v2055_v1, %v2047_v28  ;;  %v2281_v40 = vcombine.low %v2269_v39, %v2270_v50  ;;  %v1402_v48 = vshra.s32 %v4027_v19, 4 }
 0x1c2   : > { %v2222_v60 = vrot.slane %v2221_v58, 1  ;;  %v2094_v35 = vadd.f32 %v2056_v14, %v2048_v41  ;;  %v1919_v55 = vpop.f32.mrb[16].mxu0  ;;  %vm1384_vm6 = vcmp.eq.f32.partialorder %v4242_v56, inf  ;;  %vm1386_vm8 = vcmp.eq.f32.partialorder %v4242_v56, 0.0 }
 0x1c3   : > { %v2229_v16 = vrot.slane %v2228_v13, 1  ;;  %v2088_v20 = vrot.slane %v2087_v9, 4  ;;  %v1921_v43 = vpop.f32.mrb[17].mxu0  ;;  %2285 = vst [vmem:[%s416_s12] sm:$0x77] %v2281_v40  ;;  %v2119_v15 = vmul.f32 %v1919_v55, %v4194_v44  ;;  %v1519_v34 = vrot.slane %v1402_v48, %v4432_v26 }
 0x1c4   : > { %v2223_v36 = vadd.f32 %v2222_v60, %v2221_v58  ;;  %v2095_v12 = vrot.slane %v2094_v35, 4  ;;  %v2120_v32 = vmul.f32 %v1921_v43, %v4207_v10  ;;  %vm1391_vm5 = vcmp.eq.f32.partialorder %v4247_v38, inf }
 0x1c5   : > { %v2230_v37 = vadd.f32 %v2229_v16, %v2228_v13  ;;  %v2089_v4 = vadd.f32 %v2088_v20, %v2087_v9  ;;  %v1403_v14 = vshra.s32 %v3991_v62, 4  ;;  %v1387_v9 = vand.u32 2147483648, %v4242_v56 }
 0x1c6   : > { %v2271_v33 = vsel %vm2268_vm1, %v2262_v54, %v2223_v36  ;;  %v2096_v24 = vadd.f32 %v2095_v12, %v2094_v35  ;;  %v1925_v30 = vpop.f32.mrb[18].mxu0  ;;  %vm1393_vm10 = vcmp.eq.f32.partialorder %v4247_v38, 0.0  ;;  %v1394_v55 = vand.u32 2147483648, %v4247_v38 }
 0x1c7   : > { %v2272_v3 = vsel %vm2268_vm1, %v2263_v23, %v2230_v37  ;;  %v2127_v21 = vmul.f32 %v1925_v30, %v4227_v45  ;;  %v1927_v63 = vpop.f32.mrb[19].mxu0  ;;  %v2090_v53 = vrot.slane %v2089_v4, 2  ;;  %v1523_v43 = vrot.slane %v1403_v14, %v4432_v26 }
 0x1c8   : > { %v2282_v61 = vcombine.low %v2271_v33, %v2272_v3  ;;  %v2128_v47 = vmul.f32 %v1927_v63, %v4235_v42  ;;  %v2097_v18 = vrot.slane %v2096_v24, 2  ;;  %vm1530_vm15 = vcmp.eq.s32.totalorder %v4433_v25, %v1519_v34 }
 0x1c9   : > { %v2159_v22 = vadd.f32 %v2127_v21, %v2119_v15  ;;  %v2833_v29 = vpop.eup %2832  ;;  %v2091_v54 = vadd.f32 %v2090_v53, %v2089_v4  ;;  %vm1538_vm3 = vcmp.eq.s32.totalorder %v4434_v17, %v1519_v34  ;;  %vm1531_vm13 = vcmp.eq.s32.totalorder %v4433_v25, %v1523_v43 }
 0x1ca   : > { %2286 = vst [vmem:[%s416_s12 + $0x8] sm:$0x77] %v2282_v61  ;;  %v2166_v52 = vadd.f32 %v2128_v47, %v2120_v32  ;;  %v1931_v27 = vpop.f32.mrb[20].mxu0  ;;  %v2835_v49 = vpop.eup %2834  ;;  %v2098_v6 = vadd.f32 %v2097_v18, %v2096_v24  ;;  %v1383_v2 = vmul.f32 %v2833_v29, %v4242_v56  ;;  %vm1539_vm0 = vcmp.eq.s32.totalorder %v4434_v17, %v1523_v43 }
 0x1cb   : > { %v2160_v59 = vrot.slane %v2159_v22, 4  ;;  %v1933_v57 = vpop.f32.mrb[21].mxu0  ;;  %v2191_v39 = vmul.f32 %v1931_v27, %v4194_v44  ;;  %v1390_v31 = vmul.f32 %v2835_v49, %v4247_v38  ;;  %v2092_v7 = vrot.slane %v2091_v54, 1 }
 0x1cc   : > { %v2167_v0 = vrot.slane %v2166_v52, 4  ;;  %v2192_v28 = vmul.f32 %v1933_v57, %v4207_v10  ;;  %v2099_v50 = vrot.slane %v2098_v6, 1  ;;  %v2635_v47 = vsel %vm1530_vm15, 1.0, %v4402_v11 }
 0x1cd   : > { %v2161_v8 = vadd.f32 %v2160_v59, %v2159_v22  ;;  %v2093_v62 = vadd.f32 %v2092_v7, %v2091_v54  ;;  %v2643_v53 = vsel %vm1538_vm3, 1.0, %v4402_v11  ;;  %v2636_v22 = vsel %vm1531_vm13, 1.0, %v4402_v11 }
 0x1ce   : > { %v2168_v19 = vadd.f32 %v2167_v0, %v2166_v52  ;;  %v1937_v23 = vpop.f32.mrb[22].mxu0  ;;  %v2100_v33 = vadd.f32 %v2099_v50, %v2098_v6  ;;  %v2644_v18 = vsel %vm1539_vm0, 1.0, %v4402_v11 }
 0x1cf   : > { %v2162_v46 = vrot.slane %v2161_v8, 2  ;;  %v2199_v58 = vmul.f32 %v1937_v23, %v4227_v45  ;;  %v1939_v51 = vpop.f32.mrb[23].mxu0  ;;  %v1385_v45 = vsel %vm1384_vm6, %v4242_v56, %v1383_v2 }
 0x1d0   : > { %v2169_v13 = vrot.slane %v2168_v19, 2  ;;  %v2200_v1 = vmul.f32 %v1939_v51, %v4235_v42  ;;  %v1392_v42 = vsel %vm1391_vm5, %v4247_v38, %v1390_v31  ;;  %v1388_v24 = vsel %vm1386_vm8, %v1387_v9, %v1385_v45 }
 0x1d1   : > { %v2163_v60 = vadd.f32 %v2162_v46, %v2161_v8  ;;  %v2231_v41 = vadd.f32 %v2199_v58, %v2191_v39  ;;  %v1395_v21 = vsel %vm1393_vm10, %v1394_v55, %v1392_v42  ;;  %v1599_v32 = vrot.slane %v1388_v24, %v3194_v5 }
 0x1d2   : > { %v2170_v16 = vadd.f32 %v2169_v13, %v2168_v19  ;;  %v2238_v44 = vadd.f32 %v2200_v1, %v2192_v28  ;;  %v1603_v48 = vrot.slane %v1395_v21, %v3194_v5 }
 0x1d3   : > { %v2164_v36 = vrot.slane %v2163_v60, 1  ;;  %v2232_v10 = vrot.slane %v2231_v41, 4  ;;  %v1610_v17 = vmul.f32 %v2635_v47, %v1599_v32  ;;  %v1618_v57 = vmul.f32 %v2643_v53, %v1599_v32 }
 0x1d4   : > { %v2171_v40 = vrot.slane %v2170_v16, 1  ;;  %v2239_v35 = vrot.slane %v2238_v44, 4  ;;  %v1611_v0 = vmul.f32 %v2636_v22, %v1603_v48  ;;  %v1619_v49 = vmul.f32 %v2644_v18, %v1603_v48 }
 0x1d5   : > { %v2165_v37 = vadd.f32 %v2164_v36, %v2163_v60  ;;  %v2233_v20 = vadd.f32 %v2232_v10, %v2231_v41 }
 0x1d6   : > { %v2172_v12 = vadd.f32 %v2171_v40, %v2170_v16  ;;  %v2240_v3 = vadd.f32 %v2239_v35, %v2238_v44 }
 0x1d7   : > { %v2264_v4 = vsel %vm2259_vm12, %v2093_v62, %v2165_v37  ;;  %v2234_v61 = vrot.slane %v2233_v20, 2 }
 0x1d8   : > { %v2265_v30 = vsel %vm2259_vm12, %v2100_v33, %v2172_v12  ;;  %v2241_v15 = vrot.slane %v2240_v3, 2 }
 0x1d9   : > { %v2235_v26 = vadd.f32 %v2234_v61, %v2233_v20 }
 0x1da   : > { %v2242_v63 = vadd.f32 %v2241_v15, %v2240_v3 }
 0x1db   : > { %v2236_v56 = vrot.slane %v2235_v26, 1 }
 0x1dc   : > { %v2243_v38 = vrot.slane %v2242_v63, 1 }
 0x1dd   : > { %v2237_v52 = vadd.f32 %v2236_v56, %v2235_v26 }
 0x1de   : > { %v2008_v25 = vpop.f32.mrb[12].mxu1  ;;  %v2244_v27 = vadd.f32 %v2243_v38, %v2242_v63 }
 0x1df   : > { %v2010_v59 = vpop.f32.mrb[13].mxu1  ;;  %v2273_v29 = vsel %vm2268_vm1, %v2264_v4, %v2237_v52  ;;  %v2049_v54 = vmul.f32 %v2008_v25, %v1610_v17 }
 0x1e0   : > { %v2274_v5 = vsel %vm2268_vm1, %v2265_v30, %v2244_v27  ;;  %v2050_v19 = vmul.f32 %v2010_v59, %v1611_v0 }
 0x1e1   : > { %v2291_v34 = vcombine.low %v2273_v29, %v2274_v5 }
 0x1e2   : > { %v2014_v11 = vpop.f32.mrb[14].mxu1 }
 0x1e3   : > { %v2057_v8 = vmul.f32 %v2014_v11, %v1618_v57  ;;  %v2016_v6 = vpop.f32.mrb[15].mxu1  ;;  %2295 = vst [vmem:[%s4307_s17] sm:$0x77] %v2291_v34 }
 0x1e4   : > { %v2058_v23 = vmul.f32 %v2016_v6, %v1619_v49 }
 0x1e5   : > { %v2101_v2 = vadd.f32 %v2057_v8, %v2049_v54 }
 0x1e6   : > { %v2108_v46 = vadd.f32 %v2058_v23, %v2050_v19  ;;  %v2020_v39 = vpop.f32.mrb[16].mxu1 }
 0x1e7   : > { %v2102_v58 = vrot.slane %v2101_v2, 4  ;;  %v2022_v51 = vpop.f32.mrb[17].mxu1  ;;  %v2121_v7 = vmul.f32 %v2020_v39, %v1610_v17 }
 0x1e8   : > { %v2109_v31 = vrot.slane %v2108_v46, 4  ;;  %v2122_v14 = vmul.f32 %v2022_v51, %v1611_v0 }
 0x1e9   : > { %v2103_v13 = vadd.f32 %v2102_v58, %v2101_v2 }
 0x1ea   : > { %v2110_v28 = vadd.f32 %v2109_v31, %v2108_v46  ;;  %v2026_v1 = vpop.f32.mrb[18].mxu1 }
 0x1eb   : > { %v2129_v60 = vmul.f32 %v2026_v1, %v1618_v57  ;;  %v2028_v41 = vpop.f32.mrb[19].mxu1  ;;  %v2104_v16 = vrot.slane %v2103_v13, 2 }
 0x1ec   : > { %v2130_v50 = vmul.f32 %v2028_v41, %v1619_v49  ;;  %v2111_v45 = vrot.slane %v2110_v28, 2 }
 0x1ed   : > { %v2173_v44 = vadd.f32 %v2129_v60, %v2121_v7  ;;  %v2105_v35 = vadd.f32 %v2104_v16, %v2103_v13 }
 0x1ee   : > { %v2180_v9 = vadd.f32 %v2130_v50, %v2122_v14  ;;  %v2032_v36 = vpop.f32.mrb[20].mxu1  ;;  %v2112_v62 = vadd.f32 %v2111_v45, %v2110_v28 }
 0x1ef   : > { %v2174_v10 = vrot.slane %v2173_v44, 4  ;;  %v2034_v42 = vpop.f32.mrb[21].mxu1  ;;  %v2193_v33 = vmul.f32 %v2032_v36, %v1610_v17  ;;  %v2106_v30 = vrot.slane %v2105_v35, 1 }
 0x1f0   : > { %v2181_v40 = vrot.slane %v2180_v9, 4  ;;  %v2194_v61 = vmul.f32 %v2034_v42, %v1611_v0  ;;  %v2113_v26 = vrot.slane %v2112_v62, 1 }
 0x1f1   : > { %v2175_v55 = vadd.f32 %v2174_v10, %v2173_v44  ;;  %v2107_v38 = vadd.f32 %v2106_v30, %v2105_v35 }
 0x1f2   : > { %v2182_v37 = vadd.f32 %v2181_v40, %v2180_v9  ;;  %v2038_v20 = vpop.f32.mrb[22].mxu1  ;;  %v2114_v52 = vadd.f32 %v2113_v26, %v2112_v62 }
 0x1f3   : > { %v2176_v43 = vrot.slane %v2175_v55, 2  ;;  %v2201_v12 = vmul.f32 %v2038_v20, %v1618_v57  ;;  %v2040_v3 = vpop.f32.mrb[23].mxu1 }
 0x1f4   : > { %v2183_v4 = vrot.slane %v2182_v37, 2  ;;  %v2202_v24 = vmul.f32 %v2040_v3, %v1619_v49 }
 0x1f5   : > { %v2177_v15 = vadd.f32 %v2176_v43, %v2175_v55  ;;  %v2245_v21 = vadd.f32 %v2201_v12, %v2193_v33 }
 0x1f6   : > { %v2184_v63 = vadd.f32 %v2183_v4, %v2182_v37  ;;  %v2252_v32 = vadd.f32 %v2202_v24, %v2194_v61 }
 0x1f7   : > { %v2178_v56 = vrot.slane %v2177_v15, 1  ;;  %v2246_v47 = vrot.slane %v2245_v21, 4 }
 0x1f8   : > { %v2185_v48 = vrot.slane %v2184_v63, 1  ;;  %v2253_v53 = vrot.slane %v2252_v32, 4 }
 0x1f9   : > { %v2179_v22 = vadd.f32 %v2178_v56, %v2177_v15  ;;  %v2247_v18 = vadd.f32 %v2246_v47, %v2245_v21 }
 0x1fa   : > { %v2186_v25 = vadd.f32 %v2185_v48, %v2184_v63  ;;  %v2254_v27 = vadd.f32 %v2253_v53, %v2252_v32 }
 0x1fb   : > { %v2266_v17 = vsel %vm2259_vm12, %v2107_v38, %v2179_v22  ;;  %v2248_v59 = vrot.slane %v2247_v18, 2 }
 0x1fc   : > { %v2267_v57 = vsel %vm2259_vm12, %v2114_v52, %v2186_v25  ;;  %v2255_v29 = vrot.slane %v2254_v27, 2 }
 0x1fd   : > { %v2249_v0 = vadd.f32 %v2248_v59, %v2247_v18 }
 0x1fe   : > { %v2256_v49 = vadd.f32 %v2255_v29, %v2254_v27 }
 0x1ff   : > { %v2250_v5 = vrot.slane %v2249_v0, 1 }
 0x200   : > { %v2257_v34 = vrot.slane %v2256_v49, 1 }
 0x201   : > { %v2251_v11 = vadd.f32 %v2250_v5, %v2249_v0 }
 0x202   : > { %v2258_v54 = vadd.f32 %v2257_v34, %v2256_v49 }
 0x203   : > { %v2275_v8 = vsel %vm2268_vm1, %v2266_v17, %v2251_v11 }
 0x204   : > { %v2276_v6 = vsel %vm2268_vm1, %v2267_v57, %v2258_v54 }
 0x205   : > { %v2292_v19 = vcombine.low %v2275_v8, %v2276_v6 }
 0x207   : > { %2296 = vst [vmem:[%s4307_s17 + $0x8] sm:$0x77] %v2292_v19 }
 0x208 PF: > { %p2744_p4 = scmp.ge.s32.totalorder %s2933_s29, 2  ;;  %s2365_s15 = sand.u32 1, %s2913_s24  }
 0x209   : > { %s2366_s18 = scalar_lea.sflag [#allocation3], %s2365_s15 }
 0x20a   : > { %p2739_p1 = pnand %p2744_p4, %p3028_p8 }
 0x20c   : > { %2908 = dma.done.wait (!%p2739_p1), %s2366_s18, 64  }
 0x20d   : > { %2910 = vsyncadd (!%p2739_p1), %s2366_s18, 4294967232  ;;  %s22_s29 = sadd.s32 1, %s2933_s29   ;;  %s4455_s19 = sld [smem:[#allocation10_spill]] }
 0x20e   : > { %p19_p2 = scmp.ge.s32.totalorder %s22_s29, 4   ;;  %s4456_s27 = sld [smem:[#allocation8_spill]] }
 0x20f   : > { %s4457_s28 = sld [smem:[#allocation9_spill]]  ;;  %s4458_s24 = smov %s2917_s25 }
 0x210   : > { %s4459_s25 = smov %s2921_s26  ;;  %21 = sbr.rel (!%p19_p2) target bundleno = 7 (0x7), region = 115 }
 0x213   : > { %s4460_s26 = smov %s4455_s19 }
 0x217   :  { %2407 = vsyncpa [#allocation3], 1 }
 0x218   :  { %2409 = vsyncpa [#allocation3 + $0x1], 1 }
 0x219   :  { %2410 = vsyncpa [#allocation4], 1 }
 0x21a   :  { %2412 = vsyncpa [#allocation4 + $0x1], 1 }

</bundles_post_ra>
